<compile_context>
chip_gen: v7x
topology: tpu7x:2x2x1
jax: 0.10.0
libtpu: 0.0.40
codegen_flags: <defaults>
</compile_context>

<pallas_src>
import functools

import jax
import jax.numpy as jnp
from jax.experimental import pallas as pl
from jax.experimental.pallas import tpu as pltpu


# ----------------------------- in-kernel helpers -----------------------------

def _layernorm(x, g, b, eps):
    mu = jnp.mean(x, axis=-1, keepdims=True)
    var = jnp.mean((x - mu) ** 2, axis=-1, keepdims=True)
    inv = jax.lax.rsqrt(var + eps)                      # EUP rsqrt
    return (x - mu) * inv * g + b


def _attn_core(q, k, v, mask_bias, num_heads, scale):
    """q: (Lq, D), k/v: (Lk, D), mask_bias: (Lq, Lk) additive (0 / -1e9)."""
    D = q.shape[-1]
    dh = D // num_heads
    outs = []
    for h in range(num_heads):                          # static unrolled head loop
        sl = slice(h * dh, (h + 1) * dh)
        # qh @ kh^T without materializing a transpose (contract dim 1 of both).
        s = jax.lax.dot_general(q[:, sl], k[:, sl],
                                dimension_numbers=(((1,), (1,)), ((), ())),
                                preferred_element_type=jnp.float32)
        s = s * scale + mask_bias
        s = s - jnp.max(s, axis=-1, keepdims=True)
        p = jnp.exp(s)
        # EUP reciprocal instead of VALU divide.
        p = p * pl.reciprocal(jnp.sum(p, axis=-1, keepdims=True), approx=True)
        outs.append(jnp.dot(p, v[:, sl], preferred_element_type=jnp.float32))
    return jnp.concatenate(outs, axis=-1)               # (Lq, D), lane-dense


# --------------------------- fully fused decoder kernel ---------------------------

def _decoder_kernel(
        # per-batch activation blocks (constant along the layer grid axis)
        tgt_ref, mem_ref, tgt_mask_ref, src_mask_ref,
        # per-layer stacked weights (indexed by layer grid axis)
        sa_wqkv_ref, sa_bqkv_ref, sa_wo_ref, sa_bo_ref, n1g_ref, n1b_ref,
        ca_wq_ref, ca_bq_ref, ca_wkv_ref, ca_bkv_ref, ca_wo_ref, ca_bo_ref,
        n2g_ref, n2b_ref,
        ff_w1_ref, ff_b1_ref, ff_w2_ref, ff_b2_ref, n3g_ref, n3b_ref,
        # final decoder LayerNorm (constant)
        fng_ref, fnb_ref,
        # output
        out_ref,
        # VMEM scratch (carried across the layer axis)
        x_scr, tb_scr, sb_scr,
        *, num_heads, eps):
    layer = pl.program_id(1)
    D = x_scr.shape[-1]
    dh = D // num_heads
    scale = 1.0 / (dh ** 0.5)

    @pl.when(layer == 0)
    def _():
        # Seed the residual stream and precompute additive mask biases once.
        x_scr[...] = tgt_ref[0].astype(jnp.float32)
        tb_scr[...] = jnp.where(tgt_mask_ref[0, 0] < 0.5, -1e9, 0.0)
        sb_scr[...] = jnp.where(src_mask_ref[0, 0] < 0.5, -1e9, 0.0)

    x = x_scr[...]                                      # (Lt, D)
    mem = mem_ref[0]                                    # (Ls, D)
    tgt_bias = tb_scr[...]
    src_bias = sb_scr[...]

    # ---- self attention: single (D,3D) matmul, heads sliced in-register ----
    qkv = jnp.dot(x, sa_wqkv_ref[0],
                  preferred_element_type=jnp.float32) + sa_bqkv_ref[0]
    o = _attn_core(qkv[:, :D], qkv[:, D:2 * D], qkv[:, 2 * D:],
                   tgt_bias, num_heads, scale)
    o = jnp.dot(o, sa_wo_ref[0],
                preferred_element_type=jnp.float32) + sa_bo_ref[0]
    x = _layernorm(x + o, n1g_ref[0], n1b_ref[0], eps)

    # ---- cross attention: Q from tgt stream, fused (D,2D) K/V from memory ----
    q = jnp.dot(x, ca_wq_ref[0],
                preferred_element_type=jnp.float32) + ca_bq_ref[0]
    kv = jnp.dot(mem, ca_wkv_ref[0],
                 preferred_element_type=jnp.float32) + ca_bkv_ref[0]
    o = _attn_core(q, kv[:, :D], kv[:, D:], src_bias, num_heads, scale)
    o = jnp.dot(o, ca_wo_ref[0],
                preferred_element_type=jnp.float32) + ca_bo_ref[0]
    x = _layernorm(x + o, n2g_ref[0], n2b_ref[0], eps)

    # ---- position-wise feed forward ----
    h = jnp.maximum(jnp.dot(x, ff_w1_ref[0],
                            preferred_element_type=jnp.float32) + ff_b1_ref[0], 0.0)
    y = jnp.dot(h, ff_w2_ref[0],
                preferred_element_type=jnp.float32) + ff_b2_ref[0]
    x = _layernorm(x + y, n3g_ref[0], n3b_ref[0], eps)

    x_scr[...] = x                                      # carry to next layer

    @pl.when(layer == pl.num_programs(1) - 1)
    def _():
        # Final decoder LayerNorm fused; single lane-dense writeback per batch.
        out_ref[0] = _layernorm(x, fng_ref[...], fnb_ref[...], eps).astype(out_ref.dtype)


def _stacked_spec(shape):
    """Per-layer weight stacked along leading axis; block index follows layer axis."""
    blk = (1,) + tuple(shape[1:])
    zeros = (0,) * (len(shape) - 1)
    return pl.BlockSpec(blk, lambda b, l: (l,) + zeros)


def _const_spec(shape):
    """Whole-array block replicated across the grid."""
    zeros = (0,) * len(shape)
    return pl.BlockSpec(shape, lambda b, l: zeros)


# ------------------------------- decoder forward -------------------------------

def decoder_forward(params, tgt, memory, src_mask, tgt_mask, num_heads):
    """tgt: (B, Lt, D), memory: (B, Ls, D), masks: (B, 1, Lt, L*) with 1=keep."""
    B, Lt, D = tgt.shape
    Ls = memory.shape[1]
    num_layers = params['sa_wqkv'].shape[0]

    stacked = (
        params['sa_wqkv'], params['sa_bqkv'], params['sa_wo'], params['sa_bo'],
        params['n1_g'], params['n1_b'],
        params['ca_wq'], params['ca_bq'], params['ca_wkv'], params['ca_bkv'],
        params['ca_wo'], params['ca_bo'],
        params['n2_g'], params['n2_b'],
        params['ff_w1'], params['ff_b1'], params['ff_w2'], params['ff_b2'],
        params['n3_g'], params['n3_b'],
    )

    in_specs = [
        pl.BlockSpec((1, Lt, D), lambda b, l: (b, 0, 0)),         # tgt
        pl.BlockSpec((1, Ls, D), lambda b, l: (b, 0, 0)),         # memory
        pl.BlockSpec((1, 1, Lt, Lt), lambda b, l: (b, 0, 0, 0)),  # tgt_mask
        pl.BlockSpec((1, 1, Lt, Ls), lambda b, l: (b, 0, 0, 0)),  # src_mask
    ] + [_stacked_spec(w.shape) for w in stacked] + [
        _const_spec(params['norm_g'].shape),                      # final norm gamma
        _const_spec(params['norm_b'].shape),                      # final norm beta
    ]

    return pl.pallas_call(
        functools.partial(_decoder_kernel, num_heads=num_heads, eps=1e-6),
        out_shape=jax.ShapeDtypeStruct((B, Lt, D), tgt.dtype),
        grid=(B, num_layers),
        in_specs=in_specs,
        out_specs=pl.BlockSpec((1, Lt, D), lambda b, l: (b, 0, 0)),
        scratch_shapes=[
            pltpu.VMEM((Lt, D), jnp.float32),    # residual stream carry
            pltpu.VMEM((Lt, Lt), jnp.float32),   # self-attn mask bias
            pltpu.VMEM((Lt, Ls), jnp.float32),   # cross-attn mask bias
        ],
        compiler_params=pltpu.CompilerParams(
            dimension_semantics=("parallel", "arbitrary")),
    )(tgt, memory, tgt_mask, src_mask, *stacked,
      params['norm_g'], params['norm_b'])


# ------------------------------ parameter init ------------------------------

def init_decoder(key, d_model, d_ff, num_layers):
    """Per-layer weights stacked along a leading (num_layers, ...) axis."""
    L = num_layers
    ks = jax.random.split(key, 6)
    s = 1.0 / (d_model ** 0.5)
    return {
        # self-attention (fused QKV) + norm1
        'sa_wqkv': jax.random.normal(ks[0], (L, d_model, 3 * d_model), jnp.float32) * s,
        'sa_bqkv': jnp.zeros((L, 1, 3 * d_model), jnp.float32),
        'sa_wo':   jax.random.normal(ks[1], (L, d_model, d_model), jnp.float32) * s,
        'sa_bo':   jnp.zeros((L, 1, d_model), jnp.float32),
        'n1_g':    jnp.ones((L, 1, d_model), jnp.float32),
        'n1_b':    jnp.zeros((L, 1, d_model), jnp.float32),
        # cross-attention (fused KV) + norm2
        'ca_wq':   jax.random.normal(ks[2], (L, d_model, d_model), jnp.float32) * s,
        'ca_bq':   jnp.zeros((L, 1, d_model), jnp.float32),
        'ca_wkv':  jax.random.normal(ks[3], (L, d_model, 2 * d_model), jnp.float32) * s,
        'ca_bkv':  jnp.zeros((L, 1, 2 * d_model), jnp.float32),
        'ca_wo':   jax.random.normal(ks[4], (L, d_model, d_model), jnp.float32) * s,
        'ca_bo':   jnp.zeros((L, 1, d_model), jnp.float32),
        'n2_g':    jnp.ones((L, 1, d_model), jnp.float32),
        'n2_b':    jnp.zeros((L, 1, d_model), jnp.float32),
        # feed-forward + norm3
        'ff_w1':   jax.random.normal(ks[5], (L, d_model, d_ff), jnp.float32) * s,
        'ff_b1':   jnp.zeros((L, 1, d_ff), jnp.float32),
        'ff_w2':   jax.random.normal(jax.random.fold_in(key, 99),
                                     (L, d_ff, d_model), jnp.float32) / (d_ff ** 0.5),
        'ff_b2':   jnp.zeros((L, 1, d_model), jnp.float32),
        'n3_g':    jnp.ones((L, 1, d_model), jnp.float32),
        'n3_b':    jnp.zeros((L, 1, d_model), jnp.float32),
        # final decoder LayerNorm
        'norm_g':  jnp.ones((1, d_model), jnp.float32),
        'norm_b':  jnp.zeros((1, d_model), jnp.float32),
    }


# ----------------------------------- main -----------------------------------

if __name__ == "__main__":
    d_model, num_heads, d_ff, num_layers = 32, 4, 64, 2
    B, Lt, Ls = 2, 8, 8

    root = jax.random.PRNGKey(0)
    k_tgt, k_mem, k_par = jax.random.split(root, 3)

    tgt = jax.random.normal(k_tgt, (B, Lt, d_model), jnp.float32)
    memory = jax.random.normal(k_mem, (B, Ls, d_model), jnp.float32)

    # causal mask for self-attention, full-visibility mask for cross-attention
    causal = jnp.tril(jnp.ones((Lt, Lt), jnp.float32))
    tgt_mask = jnp.broadcast_to(causal, (B, 1, Lt, Lt))
    src_mask = jnp.ones((B, 1, Lt, Ls), jnp.float32)

    params = init_decoder(k_par, d_model, d_ff, num_layers)

    # TODO(synk): dropout layers are treated as identity (eval-mode semantics).
    out = decoder_forward(params, tgt, memory, src_mask, tgt_mask, num_heads)
    out = jax.block_until_ready(out)
    assert out.shape == (B, Lt, d_model)
    assert bool(jnp.all(jnp.isfinite(out)))
    print("KERNEL_OK")
</pallas_src>

<mosaic_0001>
module attributes {stable_mosaic.version = 11 : i64} {
  func.func @_decoder_kernel(%arg0: i32, %arg1: i32, %arg2: memref<1x8x32xf32, #tpu.memory_space<vmem>>, %arg3: memref<1x8x32xf32, #tpu.memory_space<vmem>>, %arg4: memref<1x1x8x8xf32, #tpu.memory_space<vmem>>, %arg5: memref<1x1x8x8xf32, #tpu.memory_space<vmem>>, %arg6: memref<1x32x96xf32, #tpu.memory_space<vmem>>, %arg7: memref<1x1x96xf32, #tpu.memory_space<vmem>>, %arg8: memref<1x32x32xf32, #tpu.memory_space<vmem>>, %arg9: memref<1x1x32xf32, #tpu.memory_space<vmem>>, %arg10: memref<1x1x32xf32, #tpu.memory_space<vmem>>, %arg11: memref<1x1x32xf32, #tpu.memory_space<vmem>>, %arg12: memref<1x32x32xf32, #tpu.memory_space<vmem>>, %arg13: memref<1x1x32xf32, #tpu.memory_space<vmem>>, %arg14: memref<1x32x64xf32, #tpu.memory_space<vmem>>, %arg15: memref<1x1x64xf32, #tpu.memory_space<vmem>>, %arg16: memref<1x32x32xf32, #tpu.memory_space<vmem>>, %arg17: memref<1x1x32xf32, #tpu.memory_space<vmem>>, %arg18: memref<1x1x32xf32, #tpu.memory_space<vmem>>, %arg19: memref<1x1x32xf32, #tpu.memory_space<vmem>>, %arg20: memref<1x32x64xf32, #tpu.memory_space<vmem>>, %arg21: memref<1x1x64xf32, #tpu.memory_space<vmem>>, %arg22: memref<1x64x32xf32, #tpu.memory_space<vmem>>, %arg23: memref<1x1x32xf32, #tpu.memory_space<vmem>>, %arg24: memref<1x1x32xf32, #tpu.memory_space<vmem>>, %arg25: memref<1x1x32xf32, #tpu.memory_space<vmem>>, %arg26: memref<1x32xf32, #tpu.memory_space<vmem>>, %arg27: memref<1x32xf32, #tpu.memory_space<vmem>>, %arg28: memref<1x8x32xf32, #tpu.memory_space<vmem>>, %arg29: memref<8x32xf32, #tpu.memory_space<vmem>>, %arg30: memref<8x8xf32, #tpu.memory_space<vmem>>, %arg31: memref<8x8xf32, #tpu.memory_space<vmem>>) attributes {dimension_semantics = [#tpu.dimension_semantics<parallel>, #tpu.dimension_semantics<arbitrary>], iteration_bounds = array<i64: 2, 2>, scalar_prefetch = 0 : i64, scratch_operands = 3 : i64, tpu.core_type = #tpu.core_type<tc>, window_params = [{transform_indices = @transform_0, window_bounds = array<i64: 1, 8, 32>}, {transform_indices = @transform_1, window_bounds = array<i64: 1, 8, 32>}, {transform_indices = @transform_2, window_bounds = array<i64: 1, 1, 8, 8>}, {transform_indices = @transform_3, window_bounds = array<i64: 1, 1, 8, 8>}, {transform_indices = @transform_4, window_bounds = array<i64: 1, 32, 96>}, {transform_indices = @transform_5, window_bounds = array<i64: 1, 1, 96>}, {transform_indices = @transform_6, window_bounds = array<i64: 1, 32, 32>}, {transform_indices = @transform_7, window_bounds = array<i64: 1, 1, 32>}, {transform_indices = @transform_8, window_bounds = array<i64: 1, 1, 32>}, {transform_indices = @transform_9, window_bounds = array<i64: 1, 1, 32>}, {transform_indices = @transform_10, window_bounds = array<i64: 1, 32, 32>}, {transform_indices = @transform_11, window_bounds = array<i64: 1, 1, 32>}, {transform_indices = @transform_12, window_bounds = array<i64: 1, 32, 64>}, {transform_indices = @transform_13, window_bounds = array<i64: 1, 1, 64>}, {transform_indices = @transform_14, window_bounds = array<i64: 1, 32, 32>}, {transform_indices = @transform_15, window_bounds = array<i64: 1, 1, 32>}, {transform_indices = @transform_16, window_bounds = array<i64: 1, 1, 32>}, {transform_indices = @transform_17, window_bounds = array<i64: 1, 1, 32>}, {transform_indices = @transform_18, window_bounds = array<i64: 1, 32, 64>}, {transform_indices = @transform_19, window_bounds = array<i64: 1, 1, 64>}, {transform_indices = @transform_20, window_bounds = array<i64: 1, 64, 32>}, {transform_indices = @transform_21, window_bounds = array<i64: 1, 1, 32>}, {transform_indices = @transform_22, window_bounds = array<i64: 1, 1, 32>}, {transform_indices = @transform_23, window_bounds = array<i64: 1, 1, 32>}, {pipeline_mode = #tpu.pipeline_mode<synchronous>, transform_indices = @transform_24, window_bounds = array<i64: 1, 32>}, {pipeline_mode = #tpu.pipeline_mode<synchronous>, transform_indices = @transform_25, window_bounds = array<i64: 1, 32>}, {transform_indices = @transform_26, window_bounds = array<i64: 1, 8, 32>}]} {
    %c0_i32 = arith.constant 0 : i32
    %0 = arith.cmpi eq, %arg1, %c0_i32 : i32
    %1 = arith.extui %0 : i1 to i32
    %c0_i32_0 = arith.constant 0 : i32
    %2 = arith.cmpi ne, %1, %c0_i32_0 : i32
    scf.if %2 {
      %c0_134 = arith.constant 0 : index
      %c0_135 = arith.constant 0 : index
      %c0_136 = arith.constant 0 : index
      %295 = vector.load %arg2[%c0_134, %c0_135, %c0_136] : memref<1x8x32xf32, #tpu.memory_space<vmem>>, vector<1x8x32xf32>
      %296 = vector.shape_cast %295 : vector<1x8x32xf32> to vector<8x32xf32>
      %c0_137 = arith.constant 0 : index
      %c0_138 = arith.constant 0 : index
      %297 = vector.load %arg29[%c0_137, %c0_138] : memref<8x32xf32, #tpu.memory_space<vmem>>, vector<8x32xf32>
      tpu.vector_store %arg29[%c0_137, %c0_138], %296 {strides = array<i32>} : memref<8x32xf32, #tpu.memory_space<vmem>>, vector<8x32xf32>,
      %c0_139 = arith.constant 0 : index
      %c0_140 = arith.constant 0 : index
      %c0_141 = arith.constant 0 : index
      %c0_142 = arith.constant 0 : index
      %298 = vector.load %arg4[%c0_139, %c0_140, %c0_141, %c0_142] : memref<1x1x8x8xf32, #tpu.memory_space<vmem>>, vector<1x1x8x8xf32>
      %299 = vector.shape_cast %298 : vector<1x1x8x8xf32> to vector<8x8xf32>
      %cst_143 = arith.constant 5.000000e-01 : f32
      %300 = vector.broadcast %cst_143 : f32 to vector<8x8xf32>
      %301 = arith.cmpf olt, %299, %300 : vector<8x8xf32>
      %cst_144 = arith.constant -1.000000e+09 : f32
      %cst_145 = arith.constant 0.000000e+00 : f32
      %302 = vector.broadcast %cst_144 : f32 to vector<8x8xf32>
      %303 = vector.broadcast %cst_145 : f32 to vector<8x8xf32>
      %304 = arith.select %301, %302, %303 : vector<8x8xi1>, vector<8x8xf32>
      %c0_146 = arith.constant 0 : index
      %c0_147 = arith.constant 0 : index
      %305 = vector.load %arg30[%c0_146, %c0_147] : memref<8x8xf32, #tpu.memory_space<vmem>>, vector<8x8xf32>
      tpu.vector_store %arg30[%c0_146, %c0_147], %304 {strides = array<i32>} : memref<8x8xf32, #tpu.memory_space<vmem>>, vector<8x8xf32>,
      %c0_148 = arith.constant 0 : index
      %c0_149 = arith.constant 0 : index
      %c0_150 = arith.constant 0 : index
      %c0_151 = arith.constant 0 : index
      %306 = vector.load %arg5[%c0_148, %c0_149, %c0_150, %c0_151] : memref<1x1x8x8xf32, #tpu.memory_space<vmem>>, vector<1x1x8x8xf32>
      %307 = vector.shape_cast %306 : vector<1x1x8x8xf32> to vector<8x8xf32>
      %cst_152 = arith.constant 5.000000e-01 : f32
      %308 = vector.broadcast %cst_152 : f32 to vector<8x8xf32>
      %309 = arith.cmpf olt, %307, %308 : vector<8x8xf32>
      %cst_153 = arith.constant -1.000000e+09 : f32
      %cst_154 = arith.constant 0.000000e+00 : f32
      %310 = vector.broadcast %cst_153 : f32 to vector<8x8xf32>
      %311 = vector.broadcast %cst_154 : f32 to vector<8x8xf32>
      %312 = arith.select %309, %310, %311 : vector<8x8xi1>, vector<8x8xf32>
      %c0_155 = arith.constant 0 : index
      %c0_156 = arith.constant 0 : index
      %313 = vector.load %arg31[%c0_155, %c0_156] : memref<8x8xf32, #tpu.memory_space<vmem>>, vector<8x8xf32>
      tpu.vector_store %arg31[%c0_155, %c0_156], %312 {strides = array<i32>} : memref<8x8xf32, #tpu.memory_space<vmem>>, vector<8x8xf32>,
    } else {
    }
    %c0 = arith.constant 0 : index
    %c0_1 = arith.constant 0 : index
    %3 = vector.load %arg29[%c0, %c0_1] : memref<8x32xf32, #tpu.memory_space<vmem>>, vector<8x32xf32>
    %c0_2 = arith.constant 0 : index
    %c0_3 = arith.constant 0 : index
    %c0_4 = arith.constant 0 : index
    %4 = vector.load %arg3[%c0_2, %c0_3, %c0_4] : memref<1x8x32xf32, #tpu.memory_space<vmem>>, vector<1x8x32xf32>
    %5 = vector.shape_cast %4 : vector<1x8x32xf32> to vector<8x32xf32>
    %c0_5 = arith.constant 0 : index
    %c0_6 = arith.constant 0 : index
    %6 = vector.load %arg30[%c0_5, %c0_6] : memref<8x8xf32, #tpu.memory_space<vmem>>, vector<8x8xf32>
    %c0_7 = arith.constant 0 : index
    %c0_8 = arith.constant 0 : index
    %7 = vector.load %arg31[%c0_7, %c0_8] : memref<8x8xf32, #tpu.memory_space<vmem>>, vector<8x8xf32>
    %c0_9 = arith.constant 0 : index
    %c0_10 = arith.constant 0 : index
    %c0_11 = arith.constant 0 : index
    %8 = vector.load %arg6[%c0_9, %c0_10, %c0_11] : memref<1x32x96xf32, #tpu.memory_space<vmem>>, vector<1x32x96xf32>
    %9 = vector.shape_cast %8 : vector<1x32x96xf32> to vector<32x96xf32>
    %cst = arith.constant dense<0.000000e+00> : vector<8x96xf32>
    %10 = tpu.matmul %3, %9, %cst {dimension_numbers = #tpu.dot_dimension_numbers<[1], [0], [0], [1], [0, 0, 1, 1], [], []>} : vector<8x32xf32>, vector<32x96xf32>, vector<8x96xf32> -> vector<8x96xf32>
    %c0_12 = arith.constant 0 : index
    %c0_13 = arith.constant 0 : index
    %c0_14 = arith.constant 0 : index
    %11 = vector.load %arg7[%c0_12, %c0_13, %c0_14] : memref<1x1x96xf32, #tpu.memory_space<vmem>>, vector<1x1x96xf32>
    %12 = vector.shape_cast %11 : vector<1x1x96xf32> to vector<1x96xf32>
    %13 = vector.broadcast %12 : vector<1x96xf32> to vector<8x96xf32>
    %14 = arith.addf %10, %13 : vector<8x96xf32>
    %15 = vector.extract_strided_slice %14 {offsets = [0, 0], sizes = [8, 32], strides = [1, 1]} : vector<8x96xf32> to vector<8x32xf32>
    %16 = vector.extract_strided_slice %14 {offsets = [0, 32], sizes = [8, 32], strides = [1, 1]} : vector<8x96xf32> to vector<8x32xf32>
    %17 = vector.extract_strided_slice %14 {offsets = [0, 64], sizes = [8, 32], strides = [1, 1]} : vector<8x96xf32> to vector<8x32xf32>
    %18 = vector.extract_strided_slice %15 {offsets = [0, 0], sizes = [8, 8], strides = [1, 1]} : vector<8x32xf32> to vector<8x8xf32>
    %19 = vector.extract_strided_slice %16 {offsets = [0, 0], sizes = [8, 8], strides = [1, 1]} : vector<8x32xf32> to vector<8x8xf32>
    %cst_15 = arith.constant dense<0.000000e+00> : vector<8x8xf32>
    %20 = tpu.matmul %18, %19, %cst_15 {dimension_numbers = #tpu.dot_dimension_numbers<[1], [1], [0], [0], [0, 0, 1, 0], [], []>} : vector<8x8xf32>, vector<8x8xf32>, vector<8x8xf32> -> vector<8x8xf32>
    %cst_16 = arith.constant 0.353553385 : f32
    %21 = vector.broadcast %cst_16 : f32 to vector<8x8xf32>
    %22 = arith.mulf %20, %21 : vector<8x8xf32>
    %23 = arith.addf %22, %6 : vector<8x8xf32>
    %cst_17 = arith.constant dense<0xFF800000> : vector<8xf32>
    %24 = vector.multi_reduction <maximumf>, %23, %cst_17 [1] : vector<8x8xf32> to vector<8xf32>
    %25 = vector.shape_cast %24 : vector<8xf32> to vector<8x1xf32>
    %26 = vector.broadcast %25 : vector<8x1xf32> to vector<8x8xf32>
    %27 = arith.subf %23, %26 : vector<8x8xf32>
    %28 = math.exp %27 : vector<8x8xf32>
    %cst_18 = arith.constant dense<0.000000e+00> : vector<8xf32>
    %29 = vector.multi_reduction <add>, %28, %cst_18 [1] : vector<8x8xf32> to vector<8xf32>
    %30 = vector.shape_cast %29 : vector<8xf32> to vector<8x1xf32>
    %31 = tpu.reciprocal %30 {approx = true} : vector<8x1xf32> -> vector<8x1xf32>
    %32 = vector.broadcast %31 : vector<8x1xf32> to vector<8x8xf32>
    %33 = arith.mulf %28, %32 : vector<8x8xf32>
    %34 = vector.extract_strided_slice %17 {offsets = [0, 0], sizes = [8, 8], strides = [1, 1]} : vector<8x32xf32> to vector<8x8xf32>
    %cst_19 = arith.constant dense<0.000000e+00> : vector<8x8xf32>
    %35 = tpu.matmul %33, %34, %cst_19 {dimension_numbers = #tpu.dot_dimension_numbers<[1], [0], [0], [1], [0, 0, 1, 1], [], []>} : vector<8x8xf32>, vector<8x8xf32>, vector<8x8xf32> -> vector<8x8xf32>
    %36 = vector.extract_strided_slice %15 {offsets = [0, 8], sizes = [8, 8], strides = [1, 1]} : vector<8x32xf32> to vector<8x8xf32>
    %37 = vector.extract_strided_slice %16 {offsets = [0, 8], sizes = [8, 8], strides = [1, 1]} : vector<8x32xf32> to vector<8x8xf32>
    %cst_20 = arith.constant dense<0.000000e+00> : vector<8x8xf32>
    %38 = tpu.matmul %36, %37, %cst_20 {dimension_numbers = #tpu.dot_dimension_numbers<[1], [1], [0], [0], [0, 0, 1, 0], [], []>} : vector<8x8xf32>, vector<8x8xf32>, vector<8x8xf32> -> vector<8x8xf32>
    %cst_21 = arith.constant 0.353553385 : f32
    %39 = vector.broadcast %cst_21 : f32 to vector<8x8xf32>
    %40 = arith.mulf %38, %39 : vector<8x8xf32>
    %41 = arith.addf %40, %6 : vector<8x8xf32>
    %cst_22 = arith.constant dense<0xFF800000> : vector<8xf32>
    %42 = vector.multi_reduction <maximumf>, %41, %cst_22 [1] : vector<8x8xf32> to vector<8xf32>
    %43 = vector.shape_cast %42 : vector<8xf32> to vector<8x1xf32>
    %44 = vector.broadcast %43 : vector<8x1xf32> to vector<8x8xf32>
    %45 = arith.subf %41, %44 : vector<8x8xf32>
    %46 = math.exp %45 : vector<8x8xf32>
    %cst_23 = arith.constant dense<0.000000e+00> : vector<8xf32>
    %47 = vector.multi_reduction <add>, %46, %cst_23 [1] : vector<8x8xf32> to vector<8xf32>
    %48 = vector.shape_cast %47 : vector<8xf32> to vector<8x1xf32>
    %49 = tpu.reciprocal %48 {approx = true} : vector<8x1xf32> -> vector<8x1xf32>
    %50 = vector.broadcast %49 : vector<8x1xf32> to vector<8x8xf32>
    %51 = arith.mulf %46, %50 : vector<8x8xf32>
    %52 = vector.extract_strided_slice %17 {offsets = [0, 8], sizes = [8, 8], strides = [1, 1]} : vector<8x32xf32> to vector<8x8xf32>
    %cst_24 = arith.constant dense<0.000000e+00> : vector<8x8xf32>
    %53 = tpu.matmul %51, %52, %cst_24 {dimension_numbers = #tpu.dot_dimension_numbers<[1], [0], [0], [1], [0, 0, 1, 1], [], []>} : vector<8x8xf32>, vector<8x8xf32>, vector<8x8xf32> -> vector<8x8xf32>
    %54 = vector.extract_strided_slice %15 {offsets = [0, 16], sizes = [8, 8], strides = [1, 1]} : vector<8x32xf32> to vector<8x8xf32>
    %55 = vector.extract_strided_slice %16 {offsets = [0, 16], sizes = [8, 8], strides = [1, 1]} : vector<8x32xf32> to vector<8x8xf32>
    %cst_25 = arith.constant dense<0.000000e+00> : vector<8x8xf32>
    %56 = tpu.matmul %54, %55, %cst_25 {dimension_numbers = #tpu.dot_dimension_numbers<[1], [1], [0], [0], [0, 0, 1, 0], [], []>} : vector<8x8xf32>, vector<8x8xf32>, vector<8x8xf32> -> vector<8x8xf32>
    %cst_26 = arith.constant 0.353553385 : f32
    %57 = vector.broadcast %cst_26 : f32 to vector<8x8xf32>
    %58 = arith.mulf %56, %57 : vector<8x8xf32>
    %59 = arith.addf %58, %6 : vector<8x8xf32>
    %cst_27 = arith.constant dense<0xFF800000> : vector<8xf32>
    %60 = vector.multi_reduction <maximumf>, %59, %cst_27 [1] : vector<8x8xf32> to vector<8xf32>
    %61 = vector.shape_cast %60 : vector<8xf32> to vector<8x1xf32>
    %62 = vector.broadcast %61 : vector<8x1xf32> to vector<8x8xf32>
    %63 = arith.subf %59, %62 : vector<8x8xf32>
    %64 = math.exp %63 : vector<8x8xf32>
    %cst_28 = arith.constant dense<0.000000e+00> : vector<8xf32>
    %65 = vector.multi_reduction <add>, %64, %cst_28 [1] : vector<8x8xf32> to vector<8xf32>
    %66 = vector.shape_cast %65 : vector<8xf32> to vector<8x1xf32>
    %67 = tpu.reciprocal %66 {approx = true} : vector<8x1xf32> -> vector<8x1xf32>
    %68 = vector.broadcast %67 : vector<8x1xf32> to vector<8x8xf32>
    %69 = arith.mulf %64, %68 : vector<8x8xf32>
    %70 = vector.extract_strided_slice %17 {offsets = [0, 16], sizes = [8, 8], strides = [1, 1]} : vector<8x32xf32> to vector<8x8xf32>
    %cst_29 = arith.constant dense<0.000000e+00> : vector<8x8xf32>
    %71 = tpu.matmul %69, %70, %cst_29 {dimension_numbers = #tpu.dot_dimension_numbers<[1], [0], [0], [1], [0, 0, 1, 1], [], []>} : vector<8x8xf32>, vector<8x8xf32>, vector<8x8xf32> -> vector<8x8xf32>
    %72 = vector.extract_strided_slice %15 {offsets = [0, 24], sizes = [8, 8], strides = [1, 1]} : vector<8x32xf32> to vector<8x8xf32>
    %73 = vector.extract_strided_slice %16 {offsets = [0, 24], sizes = [8, 8], strides = [1, 1]} : vector<8x32xf32> to vector<8x8xf32>
    %cst_30 = arith.constant dense<0.000000e+00> : vector<8x8xf32>
    %74 = tpu.matmul %72, %73, %cst_30 {dimension_numbers = #tpu.dot_dimension_numbers<[1], [1], [0], [0], [0, 0, 1, 0], [], []>} : vector<8x8xf32>, vector<8x8xf32>, vector<8x8xf32> -> vector<8x8xf32>
    %cst_31 = arith.constant 0.353553385 : f32
    %75 = vector.broadcast %cst_31 : f32 to vector<8x8xf32>
    %76 = arith.mulf %74, %75 : vector<8x8xf32>
    %77 = arith.addf %76, %6 : vector<8x8xf32>
    %cst_32 = arith.constant dense<0xFF800000> : vector<8xf32>
    %78 = vector.multi_reduction <maximumf>, %77, %cst_32 [1] : vector<8x8xf32> to vector<8xf32>
    %79 = vector.shape_cast %78 : vector<8xf32> to vector<8x1xf32>
    %80 = vector.broadcast %79 : vector<8x1xf32> to vector<8x8xf32>
    %81 = arith.subf %77, %80 : vector<8x8xf32>
    %82 = math.exp %81 : vector<8x8xf32>
    %cst_33 = arith.constant dense<0.000000e+00> : vector<8xf32>
    %83 = vector.multi_reduction <add>, %82, %cst_33 [1] : vector<8x8xf32> to vector<8xf32>
    %84 = vector.shape_cast %83 : vector<8xf32> to vector<8x1xf32>
    %85 = tpu.reciprocal %84 {approx = true} : vector<8x1xf32> -> vector<8x1xf32>
    %86 = vector.broadcast %85 : vector<8x1xf32> to vector<8x8xf32>
    %87 = arith.mulf %82, %86 : vector<8x8xf32>
    %88 = vector.extract_strided_slice %17 {offsets = [0, 24], sizes = [8, 8], strides = [1, 1]} : vector<8x32xf32> to vector<8x8xf32>
    %cst_34 = arith.constant dense<0.000000e+00> : vector<8x8xf32>
    %89 = tpu.matmul %87, %88, %cst_34 {dimension_numbers = #tpu.dot_dimension_numbers<[1], [0], [0], [1], [0, 0, 1, 1], [], []>} : vector<8x8xf32>, vector<8x8xf32>, vector<8x8xf32> -> vector<8x8xf32>
    %90 = tpu.concatenate %35, %53, %71, %89 in 1 : vector<8x8xf32>, vector<8x8xf32>, vector<8x8xf32>, vector<8x8xf32> -> vector<8x32xf32>
    %c0_35 = arith.constant 0 : index
    %c0_36 = arith.constant 0 : index
    %c0_37 = arith.constant 0 : index
    %91 = vector.load %arg8[%c0_35, %c0_36, %c0_37] : memref<1x32x32xf32, #tpu.memory_space<vmem>>, vector<1x32x32xf32>
    %92 = vector.shape_cast %91 : vector<1x32x32xf32> to vector<32x32xf32>
    %cst_38 = arith.constant dense<0.000000e+00> : vector<8x32xf32>
    %93 = tpu.matmul %90, %92, %cst_38 {dimension_numbers = #tpu.dot_dimension_numbers<[1], [0], [0], [1], [0, 0, 1, 1], [], []>} : vector<8x32xf32>, vector<32x32xf32>, vector<8x32xf32> -> vector<8x32xf32>
    %c0_39 = arith.constant 0 : index
    %c0_40 = arith.constant 0 : index
    %c0_41 = arith.constant 0 : index
    %94 = vector.load %arg9[%c0_39, %c0_40, %c0_41] : memref<1x1x32xf32, #tpu.memory_space<vmem>>, vector<1x1x32xf32>
    %95 = vector.shape_cast %94 : vector<1x1x32xf32> to vector<1x32xf32>
    %96 = vector.broadcast %95 : vector<1x32xf32> to vector<8x32xf32>
    %97 = arith.addf %93, %96 : vector<8x32xf32>
    %98 = arith.addf %3, %97 : vector<8x32xf32>
    %c0_42 = arith.constant 0 : index
    %c0_43 = arith.constant 0 : index
    %c0_44 = arith.constant 0 : index
    %99 = vector.load %arg10[%c0_42, %c0_43, %c0_44] : memref<1x1x32xf32, #tpu.memory_space<vmem>>, vector<1x1x32xf32>
    %100 = vector.shape_cast %99 : vector<1x1x32xf32> to vector<1x32xf32>
    %c0_45 = arith.constant 0 : index
    %c0_46 = arith.constant 0 : index
    %c0_47 = arith.constant 0 : index
    %101 = vector.load %arg11[%c0_45, %c0_46, %c0_47] : memref<1x1x32xf32, #tpu.memory_space<vmem>>, vector<1x1x32xf32>
    %102 = vector.shape_cast %101 : vector<1x1x32xf32> to vector<1x32xf32>
    %cst_48 = arith.constant dense<0.000000e+00> : vector<8xf32>
    %103 = vector.multi_reduction <add>, %98, %cst_48 [1] : vector<8x32xf32> to vector<8xf32>
    %104 = vector.shape_cast %103 : vector<8xf32> to vector<8x1xf32>
    %cst_49 = arith.constant 3.200000e+01 : f32
    %105 = vector.broadcast %cst_49 : f32 to vector<8x1xf32>
    %106 = arith.divf %104, %105 : vector<8x1xf32>
    %107 = vector.broadcast %106 : vector<8x1xf32> to vector<8x32xf32>
    %108 = arith.subf %98, %107 : vector<8x32xf32>
    %109 = arith.mulf %108, %108 : vector<8x32xf32>
    %cst_50 = arith.constant dense<0.000000e+00> : vector<8xf32>
    %110 = vector.multi_reduction <add>, %109, %cst_50 [1] : vector<8x32xf32> to vector<8xf32>
    %111 = vector.shape_cast %110 : vector<8xf32> to vector<8x1xf32>
    %cst_51 = arith.constant 3.200000e+01 : f32
    %112 = vector.broadcast %cst_51 : f32 to vector<8x1xf32>
    %113 = arith.divf %111, %112 : vector<8x1xf32>
    %cst_52 = arith.constant 9.99999997E-7 : f32
    %114 = vector.broadcast %cst_52 : f32 to vector<8x1xf32>
    %115 = arith.addf %113, %114 : vector<8x1xf32>
    %116 = math.rsqrt %115 : vector<8x1xf32>
    %117 = vector.broadcast %106 : vector<8x1xf32> to vector<8x32xf32>
    %118 = arith.subf %98, %117 : vector<8x32xf32>
    %119 = vector.broadcast %116 : vector<8x1xf32> to vector<8x32xf32>
    %120 = arith.mulf %118, %119 : vector<8x32xf32>
    %121 = vector.broadcast %100 : vector<1x32xf32> to vector<8x32xf32>
    %122 = arith.mulf %120, %121 : vector<8x32xf32>
    %123 = vector.broadcast %102 : vector<1x32xf32> to vector<8x32xf32>
    %124 = arith.addf %122, %123 : vector<8x32xf32>
    %c0_53 = arith.constant 0 : index
    %c0_54 = arith.constant 0 : index
    %c0_55 = arith.constant 0 : index
    %125 = vector.load %arg12[%c0_53, %c0_54, %c0_55] : memref<1x32x32xf32, #tpu.memory_space<vmem>>, vector<1x32x32xf32>
    %126 = vector.shape_cast %125 : vector<1x32x32xf32> to vector<32x32xf32>
    %cst_56 = arith.constant dense<0.000000e+00> : vector<8x32xf32>
    %127 = tpu.matmul %124, %126, %cst_56 {dimension_numbers = #tpu.dot_dimension_numbers<[1], [0], [0], [1], [0, 0, 1, 1], [], []>} : vector<8x32xf32>, vector<32x32xf32>, vector<8x32xf32> -> vector<8x32xf32>
    %c0_57 = arith.constant 0 : index
    %c0_58 = arith.constant 0 : index
    %c0_59 = arith.constant 0 : index
    %128 = vector.load %arg13[%c0_57, %c0_58, %c0_59] : memref<1x1x32xf32, #tpu.memory_space<vmem>>, vector<1x1x32xf32>
    %129 = vector.shape_cast %128 : vector<1x1x32xf32> to vector<1x32xf32>
    %130 = vector.broadcast %129 : vector<1x32xf32> to vector<8x32xf32>
    %131 = arith.addf %127, %130 : vector<8x32xf32>
    %c0_60 = arith.constant 0 : index
    %c0_61 = arith.constant 0 : index
    %c0_62 = arith.constant 0 : index
    %132 = vector.load %arg14[%c0_60, %c0_61, %c0_62] : memref<1x32x64xf32, #tpu.memory_space<vmem>>, vector<1x32x64xf32>
    %133 = vector.shape_cast %132 : vector<1x32x64xf32> to vector<32x64xf32>
    %cst_63 = arith.constant dense<0.000000e+00> : vector<8x64xf32>
    %134 = tpu.matmul %5, %133, %cst_63 {dimension_numbers = #tpu.dot_dimension_numbers<[1], [0], [0], [1], [0, 0, 1, 1], [], []>} : vector<8x32xf32>, vector<32x64xf32>, vector<8x64xf32> -> vector<8x64xf32>
    %c0_64 = arith.constant 0 : index
    %c0_65 = arith.constant 0 : index
    %c0_66 = arith.constant 0 : index
    %135 = vector.load %arg15[%c0_64, %c0_65, %c0_66] : memref<1x1x64xf32, #tpu.memory_space<vmem>>, vector<1x1x64xf32>
    %136 = vector.shape_cast %135 : vector<1x1x64xf32> to vector<1x64xf32>
    %137 = vector.broadcast %136 : vector<1x64xf32> to vector<8x64xf32>
    %138 = arith.addf %134, %137 : vector<8x64xf32>
    %139 = vector.extract_strided_slice %138 {offsets = [0, 0], sizes = [8, 32], strides = [1, 1]} : vector<8x64xf32> to vector<8x32xf32>
    %140 = vector.extract_strided_slice %138 {offsets = [0, 32], sizes = [8, 32], strides = [1, 1]} : vector<8x64xf32> to vector<8x32xf32>
    %141 = vector.extract_strided_slice %131 {offsets = [0, 0], sizes = [8, 8], strides = [1, 1]} : vector<8x32xf32> to vector<8x8xf32>
    %142 = vector.extract_strided_slice %139 {offsets = [0, 0], sizes = [8, 8], strides = [1, 1]} : vector<8x32xf32> to vector<8x8xf32>
    %cst_67 = arith.constant dense<0.000000e+00> : vector<8x8xf32>
    %143 = tpu.matmul %141, %142, %cst_67 {dimension_numbers = #tpu.dot_dimension_numbers<[1], [1], [0], [0], [0, 0, 1, 0], [], []>} : vector<8x8xf32>, vector<8x8xf32>, vector<8x8xf32> -> vector<8x8xf32>
    %cst_68 = arith.constant 0.353553385 : f32
    %144 = vector.broadcast %cst_68 : f32 to vector<8x8xf32>
    %145 = arith.mulf %143, %144 : vector<8x8xf32>
    %146 = arith.addf %145, %7 : vector<8x8xf32>
    %cst_69 = arith.constant dense<0xFF800000> : vector<8xf32>
    %147 = vector.multi_reduction <maximumf>, %146, %cst_69 [1] : vector<8x8xf32> to vector<8xf32>
    %148 = vector.shape_cast %147 : vector<8xf32> to vector<8x1xf32>
    %149 = vector.broadcast %148 : vector<8x1xf32> to vector<8x8xf32>
    %150 = arith.subf %146, %149 : vector<8x8xf32>
    %151 = math.exp %150 : vector<8x8xf32>
    %cst_70 = arith.constant dense<0.000000e+00> : vector<8xf32>
    %152 = vector.multi_reduction <add>, %151, %cst_70 [1] : vector<8x8xf32> to vector<8xf32>
    %153 = vector.shape_cast %152 : vector<8xf32> to vector<8x1xf32>
    %154 = tpu.reciprocal %153 {approx = true} : vector<8x1xf32> -> vector<8x1xf32>
    %155 = vector.broadcast %154 : vector<8x1xf32> to vector<8x8xf32>
    %156 = arith.mulf %151, %155 : vector<8x8xf32>
    %157 = vector.extract_strided_slice %140 {offsets = [0, 0], sizes = [8, 8], strides = [1, 1]} : vector<8x32xf32> to vector<8x8xf32>
    %cst_71 = arith.constant dense<0.000000e+00> : vector<8x8xf32>
    %158 = tpu.matmul %156, %157, %cst_71 {dimension_numbers = #tpu.dot_dimension_numbers<[1], [0], [0], [1], [0, 0, 1, 1], [], []>} : vector<8x8xf32>, vector<8x8xf32>, vector<8x8xf32> -> vector<8x8xf32>
    %159 = vector.extract_strided_slice %131 {offsets = [0, 8], sizes = [8, 8], strides = [1, 1]} : vector<8x32xf32> to vector<8x8xf32>
    %160 = vector.extract_strided_slice %139 {offsets = [0, 8], sizes = [8, 8], strides = [1, 1]} : vector<8x32xf32> to vector<8x8xf32>
    %cst_72 = arith.constant dense<0.000000e+00> : vector<8x8xf32>
    %161 = tpu.matmul %159, %160, %cst_72 {dimension_numbers = #tpu.dot_dimension_numbers<[1], [1], [0], [0], [0, 0, 1, 0], [], []>} : vector<8x8xf32>, vector<8x8xf32>, vector<8x8xf32> -> vector<8x8xf32>
    %cst_73 = arith.constant 0.353553385 : f32
    %162 = vector.broadcast %cst_73 : f32 to vector<8x8xf32>
    %163 = arith.mulf %161, %162 : vector<8x8xf32>
    %164 = arith.addf %163, %7 : vector<8x8xf32>
    %cst_74 = arith.constant dense<0xFF800000> : vector<8xf32>
    %165 = vector.multi_reduction <maximumf>, %164, %cst_74 [1] : vector<8x8xf32> to vector<8xf32>
    %166 = vector.shape_cast %165 : vector<8xf32> to vector<8x1xf32>
    %167 = vector.broadcast %166 : vector<8x1xf32> to vector<8x8xf32>
    %168 = arith.subf %164, %167 : vector<8x8xf32>
    %169 = math.exp %168 : vector<8x8xf32>
    %cst_75 = arith.constant dense<0.000000e+00> : vector<8xf32>
    %170 = vector.multi_reduction <add>, %169, %cst_75 [1] : vector<8x8xf32> to vector<8xf32>
    %171 = vector.shape_cast %170 : vector<8xf32> to vector<8x1xf32>
    %172 = tpu.reciprocal %171 {approx = true} : vector<8x1xf32> -> vector<8x1xf32>
    %173 = vector.broadcast %172 : vector<8x1xf32> to vector<8x8xf32>
    %174 = arith.mulf %169, %173 : vector<8x8xf32>
    %175 = vector.extract_strided_slice %140 {offsets = [0, 8], sizes = [8, 8], strides = [1, 1]} : vector<8x32xf32> to vector<8x8xf32>
    %cst_76 = arith.constant dense<0.000000e+00> : vector<8x8xf32>
    %176 = tpu.matmul %174, %175, %cst_76 {dimension_numbers = #tpu.dot_dimension_numbers<[1], [0], [0], [1], [0, 0, 1, 1], [], []>} : vector<8x8xf32>, vector<8x8xf32>, vector<8x8xf32> -> vector<8x8xf32>
    %177 = vector.extract_strided_slice %131 {offsets = [0, 16], sizes = [8, 8], strides = [1, 1]} : vector<8x32xf32> to vector<8x8xf32>
    %178 = vector.extract_strided_slice %139 {offsets = [0, 16], sizes = [8, 8], strides = [1, 1]} : vector<8x32xf32> to vector<8x8xf32>
    %cst_77 = arith.constant dense<0.000000e+00> : vector<8x8xf32>
    %179 = tpu.matmul %177, %178, %cst_77 {dimension_numbers = #tpu.dot_dimension_numbers<[1], [1], [0], [0], [0, 0, 1, 0], [], []>} : vector<8x8xf32>, vector<8x8xf32>, vector<8x8xf32> -> vector<8x8xf32>
    %cst_78 = arith.constant 0.353553385 : f32
    %180 = vector.broadcast %cst_78 : f32 to vector<8x8xf32>
    %181 = arith.mulf %179, %180 : vector<8x8xf32>
    %182 = arith.addf %181, %7 : vector<8x8xf32>
    %cst_79 = arith.constant dense<0xFF800000> : vector<8xf32>
    %183 = vector.multi_reduction <maximumf>, %182, %cst_79 [1] : vector<8x8xf32> to vector<8xf32>
    %184 = vector.shape_cast %183 : vector<8xf32> to vector<8x1xf32>
    %185 = vector.broadcast %184 : vector<8x1xf32> to vector<8x8xf32>
    %186 = arith.subf %182, %185 : vector<8x8xf32>
    %187 = math.exp %186 : vector<8x8xf32>
    %cst_80 = arith.constant dense<0.000000e+00> : vector<8xf32>
    %188 = vector.multi_reduction <add>, %187, %cst_80 [1] : vector<8x8xf32> to vector<8xf32>
    %189 = vector.shape_cast %188 : vector<8xf32> to vector<8x1xf32>
    %190 = tpu.reciprocal %189 {approx = true} : vector<8x1xf32> -> vector<8x1xf32>
    %191 = vector.broadcast %190 : vector<8x1xf32> to vector<8x8xf32>
    %192 = arith.mulf %187, %191 : vector<8x8xf32>
    %193 = vector.extract_strided_slice %140 {offsets = [0, 16], sizes = [8, 8], strides = [1, 1]} : vector<8x32xf32> to vector<8x8xf32>
    %cst_81 = arith.constant dense<0.000000e+00> : vector<8x8xf32>
    %194 = tpu.matmul %192, %193, %cst_81 {dimension_numbers = #tpu.dot_dimension_numbers<[1], [0], [0], [1], [0, 0, 1, 1], [], []>} : vector<8x8xf32>, vector<8x8xf32>, vector<8x8xf32> -> vector<8x8xf32>
    %195 = vector.extract_strided_slice %131 {offsets = [0, 24], sizes = [8, 8], strides = [1, 1]} : vector<8x32xf32> to vector<8x8xf32>
    %196 = vector.extract_strided_slice %139 {offsets = [0, 24], sizes = [8, 8], strides = [1, 1]} : vector<8x32xf32> to vector<8x8xf32>
    %cst_82 = arith.constant dense<0.000000e+00> : vector<8x8xf32>
    %197 = tpu.matmul %195, %196, %cst_82 {dimension_numbers = #tpu.dot_dimension_numbers<[1], [1], [0], [0], [0, 0, 1, 0], [], []>} : vector<8x8xf32>, vector<8x8xf32>, vector<8x8xf32> -> vector<8x8xf32>
    %cst_83 = arith.constant 0.353553385 : f32
    %198 = vector.broadcast %cst_83 : f32 to vector<8x8xf32>
    %199 = arith.mulf %197, %198 : vector<8x8xf32>
    %200 = arith.addf %199, %7 : vector<8x8xf32>
    %cst_84 = arith.constant dense<0xFF800000> : vector<8xf32>
    %201 = vector.multi_reduction <maximumf>, %200, %cst_84 [1] : vector<8x8xf32> to vector<8xf32>
    %202 = vector.shape_cast %201 : vector<8xf32> to vector<8x1xf32>
    %203 = vector.broadcast %202 : vector<8x1xf32> to vector<8x8xf32>
    %204 = arith.subf %200, %203 : vector<8x8xf32>
    %205 = math.exp %204 : vector<8x8xf32>
    %cst_85 = arith.constant dense<0.000000e+00> : vector<8xf32>
    %206 = vector.multi_reduction <add>, %205, %cst_85 [1] : vector<8x8xf32> to vector<8xf32>
    %207 = vector.shape_cast %206 : vector<8xf32> to vector<8x1xf32>
    %208 = tpu.reciprocal %207 {approx = true} : vector<8x1xf32> -> vector<8x1xf32>
    %209 = vector.broadcast %208 : vector<8x1xf32> to vector<8x8xf32>
    %210 = arith.mulf %205, %209 : vector<8x8xf32>
    %211 = vector.extract_strided_slice %140 {offsets = [0, 24], sizes = [8, 8], strides = [1, 1]} : vector<8x32xf32> to vector<8x8xf32>
    %cst_86 = arith.constant dense<0.000000e+00> : vector<8x8xf32>
    %212 = tpu.matmul %210, %211, %cst_86 {dimension_numbers = #tpu.dot_dimension_numbers<[1], [0], [0], [1], [0, 0, 1, 1], [], []>} : vector<8x8xf32>, vector<8x8xf32>, vector<8x8xf32> -> vector<8x8xf32>
    %213 = tpu.concatenate %158, %176, %194, %212 in 1 : vector<8x8xf32>, vector<8x8xf32>, vector<8x8xf32>, vector<8x8xf32> -> vector<8x32xf32>
    %c0_87 = arith.constant 0 : index
    %c0_88 = arith.constant 0 : index
    %c0_89 = arith.constant 0 : index
    %214 = vector.load %arg16[%c0_87, %c0_88, %c0_89] : memref<1x32x32xf32, #tpu.memory_space<vmem>>, vector<1x32x32xf32>
    %215 = vector.shape_cast %214 : vector<1x32x32xf32> to vector<32x32xf32>
    %cst_90 = arith.constant dense<0.000000e+00> : vector<8x32xf32>
    %216 = tpu.matmul %213, %215, %cst_90 {dimension_numbers = #tpu.dot_dimension_numbers<[1], [0], [0], [1], [0, 0, 1, 1], [], []>} : vector<8x32xf32>, vector<32x32xf32>, vector<8x32xf32> -> vector<8x32xf32>
    %c0_91 = arith.constant 0 : index
    %c0_92 = arith.constant 0 : index
    %c0_93 = arith.constant 0 : index
    %217 = vector.load %arg17[%c0_91, %c0_92, %c0_93] : memref<1x1x32xf32, #tpu.memory_space<vmem>>, vector<1x1x32xf32>
    %218 = vector.shape_cast %217 : vector<1x1x32xf32> to vector<1x32xf32>
    %219 = vector.broadcast %218 : vector<1x32xf32> to vector<8x32xf32>
    %220 = arith.addf %216, %219 : vector<8x32xf32>
    %221 = arith.addf %124, %220 : vector<8x32xf32>
    %c0_94 = arith.constant 0 : index
    %c0_95 = arith.constant 0 : index
    %c0_96 = arith.constant 0 : index
    %222 = vector.load %arg18[%c0_94, %c0_95, %c0_96] : memref<1x1x32xf32, #tpu.memory_space<vmem>>, vector<1x1x32xf32>
    %223 = vector.shape_cast %222 : vector<1x1x32xf32> to vector<1x32xf32>
    %c0_97 = arith.constant 0 : index
    %c0_98 = arith.constant 0 : index
    %c0_99 = arith.constant 0 : index
    %224 = vector.load %arg19[%c0_97, %c0_98, %c0_99] : memref<1x1x32xf32, #tpu.memory_space<vmem>>, vector<1x1x32xf32>
    %225 = vector.shape_cast %224 : vector<1x1x32xf32> to vector<1x32xf32>
    %cst_100 = arith.constant dense<0.000000e+00> : vector<8xf32>
    %226 = vector.multi_reduction <add>, %221, %cst_100 [1] : vector<8x32xf32> to vector<8xf32>
    %227 = vector.shape_cast %226 : vector<8xf32> to vector<8x1xf32>
    %cst_101 = arith.constant 3.200000e+01 : f32
    %228 = vector.broadcast %cst_101 : f32 to vector<8x1xf32>
    %229 = arith.divf %227, %228 : vector<8x1xf32>
    %230 = vector.broadcast %229 : vector<8x1xf32> to vector<8x32xf32>
    %231 = arith.subf %221, %230 : vector<8x32xf32>
    %232 = arith.mulf %231, %231 : vector<8x32xf32>
    %cst_102 = arith.constant dense<0.000000e+00> : vector<8xf32>
    %233 = vector.multi_reduction <add>, %232, %cst_102 [1] : vector<8x32xf32> to vector<8xf32>
    %234 = vector.shape_cast %233 : vector<8xf32> to vector<8x1xf32>
    %cst_103 = arith.constant 3.200000e+01 : f32
    %235 = vector.broadcast %cst_103 : f32 to vector<8x1xf32>
    %236 = arith.divf %234, %235 : vector<8x1xf32>
    %cst_104 = arith.constant 9.99999997E-7 : f32
    %237 = vector.broadcast %cst_104 : f32 to vector<8x1xf32>
    %238 = arith.addf %236, %237 : vector<8x1xf32>
    %239 = math.rsqrt %238 : vector<8x1xf32>
    %240 = vector.broadcast %229 : vector<8x1xf32> to vector<8x32xf32>
    %241 = arith.subf %221, %240 : vector<8x32xf32>
    %242 = vector.broadcast %239 : vector<8x1xf32> to vector<8x32xf32>
    %243 = arith.mulf %241, %242 : vector<8x32xf32>
    %244 = vector.broadcast %223 : vector<1x32xf32> to vector<8x32xf32>
    %245 = arith.mulf %243, %244 : vector<8x32xf32>
    %246 = vector.broadcast %225 : vector<1x32xf32> to vector<8x32xf32>
    %247 = arith.addf %245, %246 : vector<8x32xf32>
    %c0_105 = arith.constant 0 : index
    %c0_106 = arith.constant 0 : index
    %c0_107 = arith.constant 0 : index
    %248 = vector.load %arg20[%c0_105, %c0_106, %c0_107] : memref<1x32x64xf32, #tpu.memory_space<vmem>>, vector<1x32x64xf32>
    %249 = vector.shape_cast %248 : vector<1x32x64xf32> to vector<32x64xf32>
    %cst_108 = arith.constant dense<0.000000e+00> : vector<8x64xf32>
    %250 = tpu.matmul %247, %249, %cst_108 {dimension_numbers = #tpu.dot_dimension_numbers<[1], [0], [0], [1], [0, 0, 1, 1], [], []>} : vector<8x32xf32>, vector<32x64xf32>, vector<8x64xf32> -> vector<8x64xf32>
    %c0_109 = arith.constant 0 : index
    %c0_110 = arith.constant 0 : index
    %c0_111 = arith.constant 0 : index
    %251 = vector.load %arg21[%c0_109, %c0_110, %c0_111] : memref<1x1x64xf32, #tpu.memory_space<vmem>>, vector<1x1x64xf32>
    %252 = vector.shape_cast %251 : vector<1x1x64xf32> to vector<1x64xf32>
    %253 = vector.broadcast %252 : vector<1x64xf32> to vector<8x64xf32>
    %254 = arith.addf %250, %253 : vector<8x64xf32>
    %cst_112 = arith.constant 0.000000e+00 : f32
    %255 = vector.broadcast %cst_112 : f32 to vector<8x64xf32>
    %256 = arith.maximumf %254, %255 : vector<8x64xf32>
    %c0_113 = arith.constant 0 : index
    %c0_114 = arith.constant 0 : index
    %c0_115 = arith.constant 0 : index
    %257 = vector.load %arg22[%c0_113, %c0_114, %c0_115] : memref<1x64x32xf32, #tpu.memory_space<vmem>>, vector<1x64x32xf32>
    %258 = vector.shape_cast %257 : vector<1x64x32xf32> to vector<64x32xf32>
    %cst_116 = arith.constant dense<0.000000e+00> : vector<8x32xf32>
    %259 = tpu.matmul %256, %258, %cst_116 {dimension_numbers = #tpu.dot_dimension_numbers<[1], [0], [0], [1], [0, 0, 1, 1], [], []>} : vector<8x64xf32>, vector<64x32xf32>, vector<8x32xf32> -> vector<8x32xf32>
    %c0_117 = arith.constant 0 : index
    %c0_118 = arith.constant 0 : index
    %c0_119 = arith.constant 0 : index
    %260 = vector.load %arg23[%c0_117, %c0_118, %c0_119] : memref<1x1x32xf32, #tpu.memory_space<vmem>>, vector<1x1x32xf32>
    %261 = vector.shape_cast %260 : vector<1x1x32xf32> to vector<1x32xf32>
    %262 = vector.broadcast %261 : vector<1x32xf32> to vector<8x32xf32>
    %263 = arith.addf %259, %262 : vector<8x32xf32>
    %264 = arith.addf %247, %263 : vector<8x32xf32>
    %c0_120 = arith.constant 0 : index
    %c0_121 = arith.constant 0 : index
    %c0_122 = arith.constant 0 : index
    %265 = vector.load %arg24[%c0_120, %c0_121, %c0_122] : memref<1x1x32xf32, #tpu.memory_space<vmem>>, vector<1x1x32xf32>
    %266 = vector.shape_cast %265 : vector<1x1x32xf32> to vector<1x32xf32>
    %c0_123 = arith.constant 0 : index
    %c0_124 = arith.constant 0 : index
    %c0_125 = arith.constant 0 : index
    %267 = vector.load %arg25[%c0_123, %c0_124, %c0_125] : memref<1x1x32xf32, #tpu.memory_space<vmem>>, vector<1x1x32xf32>
    %268 = vector.shape_cast %267 : vector<1x1x32xf32> to vector<1x32xf32>
    %cst_126 = arith.constant dense<0.000000e+00> : vector<8xf32>
    %269 = vector.multi_reduction <add>, %264, %cst_126 [1] : vector<8x32xf32> to vector<8xf32>
    %270 = vector.shape_cast %269 : vector<8xf32> to vector<8x1xf32>
    %cst_127 = arith.constant 3.200000e+01 : f32
    %271 = vector.broadcast %cst_127 : f32 to vector<8x1xf32>
    %272 = arith.divf %270, %271 : vector<8x1xf32>
    %273 = vector.broadcast %272 : vector<8x1xf32> to vector<8x32xf32>
    %274 = arith.subf %264, %273 : vector<8x32xf32>
    %275 = arith.mulf %274, %274 : vector<8x32xf32>
    %cst_128 = arith.constant dense<0.000000e+00> : vector<8xf32>
    %276 = vector.multi_reduction <add>, %275, %cst_128 [1] : vector<8x32xf32> to vector<8xf32>
    %277 = vector.shape_cast %276 : vector<8xf32> to vector<8x1xf32>
    %cst_129 = arith.constant 3.200000e+01 : f32
    %278 = vector.broadcast %cst_129 : f32 to vector<8x1xf32>
    %279 = arith.divf %277, %278 : vector<8x1xf32>
    %cst_130 = arith.constant 9.99999997E-7 : f32
    %280 = vector.broadcast %cst_130 : f32 to vector<8x1xf32>
    %281 = arith.addf %279, %280 : vector<8x1xf32>
    %282 = math.rsqrt %281 : vector<8x1xf32>
    %283 = vector.broadcast %272 : vector<8x1xf32> to vector<8x32xf32>
    %284 = arith.subf %264, %283 : vector<8x32xf32>
    %285 = vector.broadcast %282 : vector<8x1xf32> to vector<8x32xf32>
    %286 = arith.mulf %284, %285 : vector<8x32xf32>
    %287 = vector.broadcast %266 : vector<1x32xf32> to vector<8x32xf32>
    %288 = arith.mulf %286, %287 : vector<8x32xf32>
    %289 = vector.broadcast %268 : vector<1x32xf32> to vector<8x32xf32>
    %290 = arith.addf %288, %289 : vector<8x32xf32>
    %c0_131 = arith.constant 0 : index
    %c0_132 = arith.constant 0 : index
    %291 = vector.load %arg29[%c0_131, %c0_132] : memref<8x32xf32, #tpu.memory_space<vmem>>, vector<8x32xf32>
    tpu.vector_store %arg29[%c0_131, %c0_132], %290 {strides = array<i32>} : memref<8x32xf32, #tpu.memory_space<vmem>>, vector<8x32xf32>,
    %c1_i32 = arith.constant 1 : i32
    %292 = arith.cmpi eq, %arg1, %c1_i32 : i32
    %293 = arith.extui %292 : i1 to i32
    %c0_i32_133 = arith.constant 0 : i32
    %294 = arith.cmpi ne, %293, %c0_i32_133 : i32
    scf.if %294 {
      %c0_134 = arith.constant 0 : index
      %c0_135 = arith.constant 0 : index
      %295 = vector.load %arg26[%c0_134, %c0_135] : memref<1x32xf32, #tpu.memory_space<vmem>>, vector<1x32xf32>
      %c0_136 = arith.constant 0 : index
      %c0_137 = arith.constant 0 : index
      %296 = vector.load %arg27[%c0_136, %c0_137] : memref<1x32xf32, #tpu.memory_space<vmem>>, vector<1x32xf32>
      %cst_138 = arith.constant dense<0.000000e+00> : vector<8xf32>
      %297 = vector.multi_reduction <add>, %290, %cst_138 [1] : vector<8x32xf32> to vector<8xf32>
      %298 = vector.shape_cast %297 : vector<8xf32> to vector<8x1xf32>
      %cst_139 = arith.constant 3.200000e+01 : f32
      %299 = vector.broadcast %cst_139 : f32 to vector<8x1xf32>
      %300 = arith.divf %298, %299 : vector<8x1xf32>
      %301 = vector.broadcast %300 : vector<8x1xf32> to vector<8x32xf32>
      %302 = arith.subf %290, %301 : vector<8x32xf32>
      %303 = arith.mulf %302, %302 : vector<8x32xf32>
      %cst_140 = arith.constant dense<0.000000e+00> : vector<8xf32>
      %304 = vector.multi_reduction <add>, %303, %cst_140 [1] : vector<8x32xf32> to vector<8xf32>
      %305 = vector.shape_cast %304 : vector<8xf32> to vector<8x1xf32>
      %cst_141 = arith.constant 3.200000e+01 : f32
      %306 = vector.broadcast %cst_141 : f32 to vector<8x1xf32>
      %307 = arith.divf %305, %306 : vector<8x1xf32>
      %cst_142 = arith.constant 9.99999997E-7 : f32
      %308 = vector.broadcast %cst_142 : f32 to vector<8x1xf32>
      %309 = arith.addf %307, %308 : vector<8x1xf32>
      %310 = math.rsqrt %309 : vector<8x1xf32>
      %311 = vector.broadcast %300 : vector<8x1xf32> to vector<8x32xf32>
      %312 = arith.subf %290, %311 : vector<8x32xf32>
      %313 = vector.broadcast %310 : vector<8x1xf32> to vector<8x32xf32>
      %314 = arith.mulf %312, %313 : vector<8x32xf32>
      %315 = vector.broadcast %295 : vector<1x32xf32> to vector<8x32xf32>
      %316 = arith.mulf %314, %315 : vector<8x32xf32>
      %317 = vector.broadcast %296 : vector<1x32xf32> to vector<8x32xf32>
      %318 = arith.addf %316, %317 : vector<8x32xf32>
      %c0_143 = arith.constant 0 : index
      %c0_144 = arith.constant 0 : index
      %c0_145 = arith.constant 0 : index
      %319 = vector.load %arg28[%c0_143, %c0_144, %c0_145] : memref<1x8x32xf32, #tpu.memory_space<vmem>>, vector<1x8x32xf32>
      %320 = vector.shape_cast %319 : vector<1x8x32xf32> to vector<8x32xf32>
      %321 = vector.shape_cast %318 : vector<8x32xf32> to vector<1x8x32xf32>
      tpu.vector_store %arg28[%c0_143, %c0_144, %c0_145], %321 {strides = array<i32>} : memref<1x8x32xf32, #tpu.memory_space<vmem>>, vector<1x8x32xf32>,
    } else {
    }
    return
  }
  func.func @transform_0(%arg0: i32, %arg1: i32) -> (i32, i32, i32) {
    %c0_i32 = arith.constant 0 : i32
    %c0_i32_0 = arith.constant 0 : i32
    %c0_i32_1 = arith.constant 0 : i32
    return %arg0, %c0_i32, %c0_i32_0 : i32, i32, i32
  }
  func.func @transform_1(%arg0: i32, %arg1: i32) -> (i32, i32, i32) {
    %c0_i32 = arith.constant 0 : i32
    %c0_i32_0 = arith.constant 0 : i32
    %c0_i32_1 = arith.constant 0 : i32
    return %arg0, %c0_i32, %c0_i32_0 : i32, i32, i32
  }
  func.func @transform_2(%arg0: i32, %arg1: i32) -> (i32, i32, i32, i32) {
    %c0_i32 = arith.constant 0 : i32
    %c0_i32_0 = arith.constant 0 : i32
    %c0_i32_1 = arith.constant 0 : i32
    %c0_i32_2 = arith.constant 0 : i32
    return %arg0, %c0_i32, %c0_i32_0, %c0_i32_1 : i32, i32, i32, i32
  }
  func.func @transform_3(%arg0: i32, %arg1: i32) -> (i32, i32, i32, i32) {
    %c0_i32 = arith.constant 0 : i32
    %c0_i32_0 = arith.constant 0 : i32
    %c0_i32_1 = arith.constant 0 : i32
    %c0_i32_2 = arith.constant 0 : i32
    return %arg0, %c0_i32, %c0_i32_0, %c0_i32_1 : i32, i32, i32, i32
  }
  func.func @transform_4(%arg0: i32, %arg1: i32) -> (i32, i32, i32) {
    %c0_i32 = arith.constant 0 : i32
    %c0_i32_0 = arith.constant 0 : i32
    %c0_i32_1 = arith.constant 0 : i32
    return %arg1, %c0_i32, %c0_i32_0 : i32, i32, i32
  }
  func.func @transform_5(%arg0: i32, %arg1: i32) -> (i32, i32, i32) {
    %c0_i32 = arith.constant 0 : i32
    %c0_i32_0 = arith.constant 0 : i32
    %c0_i32_1 = arith.constant 0 : i32
    return %arg1, %c0_i32, %c0_i32_0 : i32, i32, i32
  }
  func.func @transform_6(%arg0: i32, %arg1: i32) -> (i32, i32, i32) {
    %c0_i32 = arith.constant 0 : i32
    %c0_i32_0 = arith.constant 0 : i32
    %c0_i32_1 = arith.constant 0 : i32
    return %arg1, %c0_i32, %c0_i32_0 : i32, i32, i32
  }
  func.func @transform_7(%arg0: i32, %arg1: i32) -> (i32, i32, i32) {
    %c0_i32 = arith.constant 0 : i32
    %c0_i32_0 = arith.constant 0 : i32
    %c0_i32_1 = arith.constant 0 : i32
    return %arg1, %c0_i32, %c0_i32_0 : i32, i32, i32
  }
  func.func @transform_8(%arg0: i32, %arg1: i32) -> (i32, i32, i32) {
    %c0_i32 = arith.constant 0 : i32
    %c0_i32_0 = arith.constant 0 : i32
    %c0_i32_1 = arith.constant 0 : i32
    return %arg1, %c0_i32, %c0_i32_0 : i32, i32, i32
  }
  func.func @transform_9(%arg0: i32, %arg1: i32) -> (i32, i32, i32) {
    %c0_i32 = arith.constant 0 : i32
    %c0_i32_0 = arith.constant 0 : i32
    %c0_i32_1 = arith.constant 0 : i32
    return %arg1, %c0_i32, %c0_i32_0 : i32, i32, i32
  }
  func.func @transform_10(%arg0: i32, %arg1: i32) -> (i32, i32, i32) {
    %c0_i32 = arith.constant 0 : i32
    %c0_i32_0 = arith.constant 0 : i32
    %c0_i32_1 = arith.constant 0 : i32
    return %arg1, %c0_i32, %c0_i32_0 : i32, i32, i32
  }
  func.func @transform_11(%arg0: i32, %arg1: i32) -> (i32, i32, i32) {
    %c0_i32 = arith.constant 0 : i32
    %c0_i32_0 = arith.constant 0 : i32
    %c0_i32_1 = arith.constant 0 : i32
    return %arg1, %c0_i32, %c0_i32_0 : i32, i32, i32
  }
  func.func @transform_12(%arg0: i32, %arg1: i32) -> (i32, i32, i32) {
    %c0_i32 = arith.constant 0 : i32
    %c0_i32_0 = arith.constant 0 : i32
    %c0_i32_1 = arith.constant 0 : i32
    return %arg1, %c0_i32, %c0_i32_0 : i32, i32, i32
  }
  func.func @transform_13(%arg0: i32, %arg1: i32) -> (i32, i32, i32) {
    %c0_i32 = arith.constant 0 : i32
    %c0_i32_0 = arith.constant 0 : i32
    %c0_i32_1 = arith.constant 0 : i32
    return %arg1, %c0_i32, %c0_i32_0 : i32, i32, i32
  }
  func.func @transform_14(%arg0: i32, %arg1: i32) -> (i32, i32, i32) {
    %c0_i32 = arith.constant 0 : i32
    %c0_i32_0 = arith.constant 0 : i32
    %c0_i32_1 = arith.constant 0 : i32
    return %arg1, %c0_i32, %c0_i32_0 : i32, i32, i32
  }
  func.func @transform_15(%arg0: i32, %arg1: i32) -> (i32, i32, i32) {
    %c0_i32 = arith.constant 0 : i32
    %c0_i32_0 = arith.constant 0 : i32
    %c0_i32_1 = arith.constant 0 : i32
    return %arg1, %c0_i32, %c0_i32_0 : i32, i32, i32
  }
  func.func @transform_16(%arg0: i32, %arg1: i32) -> (i32, i32, i32) {
    %c0_i32 = arith.constant 0 : i32
    %c0_i32_0 = arith.constant 0 : i32
    %c0_i32_1 = arith.constant 0 : i32
    return %arg1, %c0_i32, %c0_i32_0 : i32, i32, i32
  }
  func.func @transform_17(%arg0: i32, %arg1: i32) -> (i32, i32, i32) {
    %c0_i32 = arith.constant 0 : i32
    %c0_i32_0 = arith.constant 0 : i32
    %c0_i32_1 = arith.constant 0 : i32
    return %arg1, %c0_i32, %c0_i32_0 : i32, i32, i32
  }
  func.func @transform_18(%arg0: i32, %arg1: i32) -> (i32, i32, i32) {
    %c0_i32 = arith.constant 0 : i32
    %c0_i32_0 = arith.constant 0 : i32
    %c0_i32_1 = arith.constant 0 : i32
    return %arg1, %c0_i32, %c0_i32_0 : i32, i32, i32
  }
  func.func @transform_19(%arg0: i32, %arg1: i32) -> (i32, i32, i32) {
    %c0_i32 = arith.constant 0 : i32
    %c0_i32_0 = arith.constant 0 : i32
    %c0_i32_1 = arith.constant 0 : i32
    return %arg1, %c0_i32, %c0_i32_0 : i32, i32, i32
  }
  func.func @transform_20(%arg0: i32, %arg1: i32) -> (i32, i32, i32) {
    %c0_i32 = arith.constant 0 : i32
    %c0_i32_0 = arith.constant 0 : i32
    %c0_i32_1 = arith.constant 0 : i32
    return %arg1, %c0_i32, %c0_i32_0 : i32, i32, i32
  }
  func.func @transform_21(%arg0: i32, %arg1: i32) -> (i32, i32, i32) {
    %c0_i32 = arith.constant 0 : i32
    %c0_i32_0 = arith.constant 0 : i32
    %c0_i32_1 = arith.constant 0 : i32
    return %arg1, %c0_i32, %c0_i32_0 : i32, i32, i32
  }
  func.func @transform_22(%arg0: i32, %arg1: i32) -> (i32, i32, i32) {
    %c0_i32 = arith.constant 0 : i32
    %c0_i32_0 = arith.constant 0 : i32
    %c0_i32_1 = arith.constant 0 : i32
    return %arg1, %c0_i32, %c0_i32_0 : i32, i32, i32
  }
  func.func @transform_23(%arg0: i32, %arg1: i32) -> (i32, i32, i32) {
    %c0_i32 = arith.constant 0 : i32
    %c0_i32_0 = arith.constant 0 : i32
    %c0_i32_1 = arith.constant 0 : i32
    return %arg1, %c0_i32, %c0_i32_0 : i32, i32, i32
  }
  func.func @transform_24(%arg0: i32, %arg1: i32) -> (i32, i32) {
    %c0_i32 = arith.constant 0 : i32
    %c0_i32_0 = arith.constant 0 : i32
    %c0_i32_1 = arith.constant 0 : i32
    return %c0_i32, %c0_i32_0 : i32, i32
  }
  func.func @transform_25(%arg0: i32, %arg1: i32) -> (i32, i32) {
    %c0_i32 = arith.constant 0 : i32
    %c0_i32_0 = arith.constant 0 : i32
    %c0_i32_1 = arith.constant 0 : i32
    return %c0_i32, %c0_i32_0 : i32, i32
  }
  func.func @transform_26(%arg0: i32, %arg1: i32) -> (i32, i32, i32) {
    %c0_i32 = arith.constant 0 : i32
    %c0_i32_0 = arith.constant 0 : i32
    %c0_i32_1 = arith.constant 0 : i32
    return %arg0, %c0_i32, %c0_i32_0 : i32, i32, i32
  }
}

</mosaic_0001>

<bundles_post_ra>
// kernel: tpu_custom_call.1
= control target key start
LH: loop header
LB: loop body
LE: loop exit
PB: predicated region body
PF: predicated region fallthrough
CT: control target
= control target key end

     0   :  { %s6233_s0 = inlined_call_operand.hbm [shape: f32[2,8,32], index: 0, kind: input, shape index: {}]   ;;  %s6234_s1 = inlined_call_operand.hbm [shape: f32[2,8,32], index: 1, kind: input, shape index: {}]   ;;  %s6235_s2 = inlined_call_operand.hbm [shape: f32[2,1,8,8], index: 2, kind: input, shape index: {}]   ;;  %s6236_s3 = inlined_call_operand.hbm [shape: f32[2,1,8,8], index: 3, kind: input, shape index: {}]   ;;  %s6237_s4 = inlined_call_operand.vmem [shape: f32[2,32,96], index: 4, kind: input, shape index: {}]   ;;  %s6238_s5 = inlined_call_operand.vmem [shape: f32[2,1,96], index: 5, kind: input, shape index: {}]   ;;  %s6239_s6 = inlined_call_operand.vmem [shape: f32[2,32,32], index: 6, kind: input, shape index: {}]   ;;  %s6240_s7 = inlined_call_operand.vmem [shape: f32[2,1,32], index: 7, kind: input, shape index: {}]   ;;  %s6241_s8 = inlined_call_operand.vmem [shape: f32[2,1,32], index: 8, kind: input, shape index: {}]   ;;  %s6242_s9 = inlined_call_operand.vmem [shape: f32[2,1,32], index: 9, kind: input, shape index: {}]   ;;  %s6243_s10 = inlined_call_operand.vmem [shape: f32[2,32,32], index: 10, kind: input, shape index: {}]   ;;  %s6244_s11 = inlined_call_operand.vmem [shape: f32[2,1,32], index: 11, kind: input, shape index: {}]   ;;  %s6245_s12 = inlined_call_operand.hbm [shape: f32[2,32,64], index: 12, kind: input, shape index: {}]   ;;  %s6246_s13 = inlined_call_operand.hbm [shape: f32[2,1,64], index: 13, kind: input, shape index: {}]   ;;  %s6247_s14 = inlined_call_operand.hbm [shape: f32[2,32,32], index: 14, kind: input, shape index: {}]   ;;  %s6248_s15 = inlined_call_operand.hbm [shape: f32[2,1,32], index: 15, kind: input, shape index: {}]   ;;  %s6249_s16 = inlined_call_operand.hbm [shape: f32[2,1,32], index: 16, kind: input, shape index: {}]   ;;  %s6250_s17 = inlined_call_operand.hbm [shape: f32[2,1,32], index: 17, kind: input, shape index: {}]   ;;  %s6251_s18 = inlined_call_operand.hbm [shape: f32[2,32,64], index: 18, kind: input, shape index: {}]   ;;  %s6252_s19 = inlined_call_operand.hbm [shape: f32[2,1,64], index: 19, kind: input, shape index: {}]   ;;  %s6253_s20 = inlined_call_operand.vmem [shape: f32[2,64,32], index: 20, kind: input, shape index: {}]   ;;  %s6254_s21 = inlined_call_operand.vmem [shape: f32[2,1,32], index: 21, kind: input, shape index: {}]   ;;  %s6255_s22 = inlined_call_operand.vmem [shape: f32[2,1,32], index: 22, kind: input, shape index: {}]   ;;  %s6256_s23 = inlined_call_operand.vmem [shape: f32[2,1,32], index: 23, kind: input, shape index: {}]   ;;  %s6257_s24 = inlined_call_operand.vmem [shape: f32[1,32], index: 24, kind: input, shape index: {}]   ;;  %s6258_s25 = inlined_call_operand.vmem [shape: f32[1,32], index: 25, kind: input, shape index: {}]   ;;  %s6259_s26 = inlined_call_operand.hbm [shape: f32[2,8,32], index: 26, kind: output, shape index: {}]  }
   0x1   :  { %6307 = sst [smem:[#allocation56_spill]] %s6233_s0 }
   0x2   :  { %6308 = sst [smem:[#allocation57_spill]] %s6234_s1 }
   0x3   :  { %6309 = sst [smem:[#allocation58_spill]] %s6235_s2 }
   0x4   :  { %6310 = sst [smem:[#allocation59_spill]] %s6236_s3 }
   0x5   :  { %6311 = sst [smem:[#allocation60_spill]] %s6237_s4 }
   0x6   :  { %6312 = sst [smem:[#allocation61_spill]] %s6238_s5 }
   0x7   :  { %6313 = sst [smem:[#allocation62_spill]] %s6239_s6 }
   0x8   :  { %6314 = sst [smem:[#allocation63_spill]] %s6240_s7 }
   0x9   :  { %6315 = sst [smem:[#allocation64_spill]] %s6241_s8 }
   0xa   :  { %6316 = sst [smem:[#allocation65_spill]] %s6242_s9 }
   0xb   :  { %6317 = sst [smem:[#allocation66_spill]] %s6243_s10 }
   0xc   :  { %6318 = sst [smem:[#allocation67_spill]] %s6244_s11 }
   0xd   :  { %6319 = sst [smem:[#allocation68_spill]] %s6245_s12 }
   0xe   :  { %6320 = sst [smem:[#allocation69_spill]] %s6246_s13 }
   0xf   :  { %6321 = sst [smem:[#allocation70_spill]] %s6247_s14 }
  0x10   :  { %6322 = sst [smem:[#allocation71_spill]] %s6248_s15 }
  0x11   :  { %6323 = sst [smem:[#allocation72_spill]] %s6249_s16 }
  0x12   :  { %6324 = sst [smem:[#allocation73_spill]] %s6250_s17 }
  0x13   :  { %6325 = sst [smem:[#allocation74_spill]] %s6251_s18 }
  0x14   :  { %6326 = sst [smem:[#allocation75_spill]] %s6252_s19 }
  0x15   :  { %6327 = sst [smem:[#allocation76_spill]] %s6253_s20 }
  0x16   :  { %6328 = sst [smem:[#allocation77_spill]] %s6254_s21 }
  0x17   :  { %6329 = sst [smem:[#allocation78_spill]] %s6255_s22 }
  0x18   :  { %6330 = sst [smem:[#allocation79_spill]] %s6256_s23 }
  0x19   :  { %6331 = sst [smem:[#allocation80_spill]] %s6257_s24 }
  0x1a   :  { %6332 = sst [smem:[#allocation81_spill]] %s6258_s25 }
  0x1b   :  { %6333 = sst [smem:[#allocation82_spill]] %s6259_s26 }
  0x1c   :  { %31 = vsyncpa [#allocation6], 0 }
  0x1d   :  { %33 = vsyncpa [#allocation6 + $0x1], 0 }
  0x1e   :  { %34 = vsyncpa [#allocation9], 0 }
  0x1f   :  { %36 = vsyncpa [#allocation9 + $0x1], 0 }
  0x20   :  { %37 = vsyncpa [#allocation12], 0 }
  0x21   :  { %39 = vsyncpa [#allocation12 + $0x1], 0 }
  0x22   :  { %40 = vsyncpa [#allocation15], 0 }
  0x23   :  { %42 = vsyncpa [#allocation15 + $0x1], 0 }
  0x24   :  { %43 = vsyncpa [#allocation18], 0 }
  0x25   :  { %45 = vsyncpa [#allocation18 + $0x1], 0 }
  0x26   :  { %46 = vsyncpa [#allocation21], 0 }
  0x27   :  { %48 = vsyncpa [#allocation21 + $0x1], 0 }
  0x28   :  { %49 = vsyncpa [#allocation24], 0 }
  0x29   :  { %51 = vsyncpa [#allocation24 + $0x1], 0 }
  0x2a   :  { %52 = vsyncpa [#allocation7], 0 }
  0x2b   :  { %54 = vsyncpa [#allocation7 + $0x1], 0  ;;  %s5225_s27 = smov 0   ;;  %s5227_s3 = smov 0  }
  0x2c   :  { %s5229_s7 = smov 0   ;;  %s5231_s28 = smov 0  }
  0x2d   :  { %s5233_s8 = smov 0   ;;  %s5235_s4 = smov 0  }
  0x2e   :  { %s5237_s29 = smov 0   ;;  %s5239_s0 = smov 0  }
  0x2f   :  { %s5241_s9 = smov 0   ;;  %s5243_s30 = smov 0  }
  0x30   :  { %s5245_s2 = smov 0  }
  0x31 LB: > { %6334 = sst [smem:[#allocation35_spill]] %s5019_s3  ;;  %s5279_s5 = sadd.s32 4294967295, %s5055_s2   ;;  %s5055_s2 = sphi %s5245_s2, %s60_s2   ;;  %s5051_s30 = sphi %s5243_s30, %s6467_s30   ;;  %s5047_s9 = sphi %s5241_s9, %s6466_s9   ;;  %s5043_s0 = sphi %s5239_s0, %s6465_s0   ;;  %s5039_s29 = sphi %s5237_s29, %s6464_s29   ;;  %s5035_s4 = sphi %s5235_s4, %s6463_s4   ;;  %s5031_s8 = sphi %s5233_s8, %s6462_s8   ;;  %s5027_s28 = sphi %s5231_s28, %s6461_s28   ;;  %s5023_s7 = sphi %s5229_s7, %s6460_s7   ;;  %s5019_s3 = sphi %s5227_s3, %s6459_s3   ;;  %s5015_s27 = sphi %s5225_s27, %s6458_s27  }
  0x32   : > { %6335 = sst [smem:[#allocation36_spill]] %s5023_s7  ;;  %s3943_s10 = sadd.s32 4294967294, %s5055_s2  }
  0x33   : > { %6336 = sst [smem:[#allocation37_spill]] %s5027_s28  ;;  %p86_p0 = scmp.ne.s32.totalorder %s5035_s4, %s5031_s8 }
  0x34   : > { %6337 = sst [smem:[#allocation38_spill]] %s5031_s8  ;;  %p87_p1 = scmp.eq.s32.totalorder %s5055_s2, 0 }
  0x35   : > { %6338 = sst [smem:[#allocation39_spill]] %s5035_s4  ;;  %p92_p2 = scmp.ne.s32.totalorder %s5031_s8, %s5027_s28 }
  0x36   : > { %6339 = sst [smem:[#allocation40_spill]] %s5039_s29  ;;  %p93_p3 = scmp.eq.s32.totalorder %s5279_s5, 0 }
  0x37   : > { %6340 = sst [smem:[#allocation41_spill]] %s5043_s0  ;;  %p5290_p4 = por %p87_p1, %p86_p0 }
  0x38   : > { %6341 = sst [smem:[#allocation42_spill]] %s5047_s9  ;;  %p398_p5 = scmp.ne.s32.totalorder %s5023_s7, %s5019_s3 }
  0x39   : > { %6342 = sst [smem:[#allocation43_spill]] %s5051_s30  ;;  %p5296_p6 = por %p93_p3, %p92_p2 }
  0x3a   : > { %6343 = sst [smem:[#allocation44_spill]] %s5055_s2  ;;  %p404_p7 = scmp.ne.s32.totalorder %s5019_s3, %s5015_s27 }
  0x3b   : > { %6344 = sst [smem:[#allocation45_spill]] %s5279_s5  ;;  %p5301_p8 = por %p398_p5, %p87_p1 }
  0x3c   : > { %s6346_s0 = scalar_select %p5296_p6, 1, 0 }
  0x3d   : > { %p756_p9 = scmp.eq.s32.totalorder %s5279_s5, 3  ;;  %p5306_p10 = por %p404_p7, %p93_p3 }
  0x3e   : > { %6347 = sst [smem:[#allocation46_spill]] %s6346_s0  ;;  %p762_p11 = scmp.eq.s32.totalorder %s3943_s10, 3 }
  0x3f   : > { %s6349_s6 = scalar_select %p5306_p10, 1, 0 }
  0x40   : > { %p5310_p12 = por %p756_p9, %p86_p0  ;;  %p5314_p13 = por %p762_p11, %p92_p2 }
  0x41   : > { %6350 = sst [smem:[#allocation47_spill]] %s6349_s6  ;;  %p4395_p6 = scmp.lt.s32.totalorder %s5055_s2, 4 }
  0x42   : > { %s6351_s28 = scalar_select %p5310_p12, 1, 0 }
  0x43   : > { %s6353_s25 = scalar_select %p5314_p13, 1, 0 }
  0x44   : > { %6352 = sst [smem:[#allocation48_spill]] %s6351_s28  ;;  %s6270_s27 = sand.u32 1, %s5035_s4  }
  0x45   : > { %6354 = sst [smem:[#allocation49_spill]] %s6353_s25  ;;  %s5321_s24 = sshll.u32 %s5051_s30, 7 }
  0x46   : > { %s5325_s23 = sshll.u32 %s6270_s27, 3  ;;  %p5329_p1 = pnand %p4395_p6, %p5290_p4 }
  0x47   : > { %s5334_s28 = sand.u32 1, %s5055_s2   ;;  %s6356_s25 = sld [smem:[#allocation57_spill]] }
  0x48   : > { %s6355_s10 = scalar_select %p5329_p1, 1, 0 }
  0x49   : > { %s810_s27 = scalar_lea.vmem [#allocation8], %s5325_s23  ;;  %p5347_p0 = pnand %p4395_p6, %p5301_p8 }
  0x4a   : > { %s817_s26 = sshll.u32 %s810_s27, 4  ;;  %p5356_p3 = pneg %p5329_p1  ;;  %s5343_s26 = int_to_ptr.vmem [resolvable:$true] %s817_s26 }
  0x4b   : > { %s6357_s11 = scalar_select %p5347_p0, 1, 0 }
  0x4c   : > { %s6358_s21 = scalar_select %p5356_p3, 1, 0 }
  0x4d   : > { %s5340_s20 = scalar_lea.hbm %s6356_s25, %s5321_s24  ;;  %s4550_s1 = scalar_lea.hbm %s6356_s25, 256 }
  0x4e   : > { %s4545_s6 = scalar_lea.hbm %s5340_s20, 128  ;;  %p4551_p6 = scmp.lt.u32.totalorder %s5340_s20, %s6356_s25 }
  0x4f   : > { %p4546_p2 = scmp.ne.s32.totalorder %s5340_s20, %s4545_s6  ;;  %p4552_p7 = scmp.lt.u32.totalorder %s4550_s1, %s4545_s6 }
  0x50   : > { %p4554_p9 = scmp.lt.u32.totalorder %s4545_s6, %s5340_s20 }
  0x51   : > { %p4548_p4 = pnand %p5356_p3, %p4546_p2  ;;  %p4553_p8 = por %p4552_p7, %p4551_p6 }
  0x53   : > { %p4549_p5 = pneg %p4548_p4  ;;  %p4555_p11 = por %p4554_p9, %p4553_p8 }
  0x55   : > { %p4556_p13 = pnand %p4555_p11, %p4549_p5 }
  0x57   : > { %4559 = shalt.err (!%p4556_p13)
}
  0x58   : > { %s4560_s29 = scalar_lea.vmem %s5343_s26, 128  ;;  %s5057_s22 = smov [#allocation8]  }
  0x59   : > { %p4561_p2 = scmp.ne.s32.totalorder %s5343_s26, %s4560_s29  ;;  %s4565_s27 = sshll.u32 %s5057_s22, 4  ;;  %s4566_s27 = int_to_ptr.vmem [resolvable:$false] %s4565_s27 }
  0x5a   : > { %s4567_s3 = scalar_lea.vmem %s4566_s27, 256  ;;  %p4568_p10 = scmp.lt.s32.totalorder %s5343_s26, %s4566_s27 }
  0x5b   : > { %p4563_p4 = pnand %p4561_p2, %p5356_p3  ;;  %p4569_p0 = scmp.lt.s32.totalorder %s4567_s3, %s4560_s29 }
  0x5d   : > { %p4564_p12 = pneg %p4563_p4  ;;  %p4570_p6 = por %p4569_p0, %p4568_p10 }
  0x5f   : > { %p4571_p7 = pnand %p4570_p6, %p4564_p12 }
  0x61   : > { %4574 = shalt.err (!%p4571_p7)
}
  0x62   : > { %s6359_s5 = scalar_lea.sflag [#allocation9], %s5334_s28  ;;  %p3968_p13 = scmp.ge.s32.totalorder %s5055_s2, 1 }
  0x63   : > { %4360 = dma.hbm_to_vmem [thread:$0]  (!%p5329_p1), %s5340_s20, 128, %s5343_s26, %s6359_s5  }
  0x64   : > { %p1086_p5 = scmp.lt.s32.totalorder %s5055_s2, 5  ;;  %s6360_s1 = sld [smem:[#allocation59_spill]] }
  0x65   : > { %s846_s3 = scalar_lea.vmem [#allocation11], %s5325_s23 }
  0x66   : > { %p5389_p10 = pnand %p3968_p13, %p1086_p5  ;;  %s853_s25 = sshll.u32 %s846_s3, 4  ;;  %s854_s25 = int_to_ptr.vmem [resolvable:$true] %s853_s25 }
  0x68   : > { %s6361_s27 = scalar_select %p5389_p10, 1, 0 }
  0x6a   : > { %s5387_s22 = scalar_lea.hbm %s6360_s1, %s5321_s24  ;;  %6362 = sst [smem:[#allocation50_spill]] %s6361_s27 }
  0x6b   : > { %s4575_s20 = scalar_lea.hbm %s5387_s22, 128  ;;  %s4580_s6 = scalar_lea.hbm %s6360_s1, 256 }
  0x6c   : > { %p4576_p12 = scmp.ne.s32.totalorder %s5387_s22, %s4575_s20  ;;  %p4581_p9 = scmp.lt.u32.totalorder %s5387_s22, %s6360_s1 }
  0x6d   : > { %p4582_p11 = scmp.lt.u32.totalorder %s4580_s6, %s4575_s20  ;;  %p4584_p4 = scmp.lt.u32.totalorder %s4575_s20, %s5387_s22 }
  0x6e   : > { %p4578_p0 = pnand %p4576_p12, %p5356_p3 }
  0x6f   : > { %p4583_p2 = por %p4582_p11, %p4581_p9 }
  0x70   : > { %p4579_p8 = pneg %p4578_p0 }
  0x71   : > { %p4585_p6 = por %p4584_p4, %p4583_p2 }
  0x73   : > { %p4586_p7 = pnand %p4585_p6, %p4579_p8 }
  0x75   : > { %4589 = shalt.err (!%p4586_p7)
}
  0x76   : > { %s4590_s3 = scalar_lea.vmem %s854_s25, 128  ;;  %s5058_s0 = smov [#allocation11]  }
  0x77   : > { %p4591_p13 = scmp.ne.s32.totalorder %s854_s25, %s4590_s3  ;;  %s4595_s8 = sshll.u32 %s5058_s0, 4  ;;  %s4596_s8 = int_to_ptr.vmem [resolvable:$false] %s4595_s8 }
  0x78   : > { %s4597_s26 = scalar_lea.vmem %s4596_s8, 256  ;;  %p4598_p0 = scmp.lt.s32.totalorder %s854_s25, %s4596_s8 }
  0x79   : > { %p4593_p5 = pnand %p4591_p13, %p5356_p3  ;;  %p4599_p10 = scmp.lt.s32.totalorder %s4597_s26, %s4590_s3 }
  0x7b   : > { %p4594_p12 = pneg %p4593_p5  ;;  %p4600_p1 = por %p4599_p10, %p4598_p0 }
  0x7d   : > { %p4601_p9 = pnand %p4600_p1, %p4594_p12 }
  0x7f   : > { %4604 = shalt.err (!%p4601_p9)
}
  0x80   : > { %p6363_p11 = scmp.ne.s32.totalorder %s6355_s10, 0  ;;  %s6364_s2 = scalar_lea.sflag [#allocation12], %s5334_s28 }
  0x81   : > { %s391_s8 = sadd.s32 1, %s5023_s7  ;;  %s69_s0 = sadd.s32 1, %s5047_s9 }
  0x82   : > { %4366 = dma.hbm_to_vmem [thread:$0]  (!%p6363_p11), %s5387_s22, 128, %s854_s25, %s6364_s2  }
  0x83   : > { %s5417_s20 = sand.u32 1, %s5023_s7   ;;  %p70_p1 = scmp.ge.s32.totalorder %s69_s0, 2 }
  0x84   : > { %s5420_s5 = sshll.u32 %s5047_s9, 4  ;;  %s6366_s6 = sadd.s32 1, %s5051_s30 }
  0x85   : > { %s6469_s0 = smov (%p70_p1, %s69_s0), 0  ;;  %s6471_s6 = smov (!%p70_p1, %s6366_s6), %s5051_s30 }
  0x86   : > { %6365 = sst [smem:[#allocation51_spill]] %s6469_s0  ;;  %s388_s29 = ssub.s32 %s5047_s9, %s6469_s0 }
  0x87   : > { %s6367_s13 = sld [smem:[#allocation69_spill]]  ;;  %p74_p10 = scmp.ge.s32.totalorder %s6471_s6, 2 }
  0x88   : > { %p389_p8 = scmp.eq.s32.totalorder %s388_s29, 0  ;;  %s938_s26 = scalar_lea.vmem [#allocation14], %s5417_s20 }
  0x89   : > { %s945_s2 = sshll.u32 %s938_s26, 4  ;;  %s6473_s6 = smov (%p74_p10, %s6471_s6), 0  ;;  %s5443_s2 = int_to_ptr.vmem [resolvable:$true] %s945_s2 }
  0x8a   : > { %6368 = sst [smem:[#allocation52_spill]] %s6473_s6  ;;  %s76_s27 = ssub.s32 %s5051_s30, %s6473_s6 }
  0x8b   : > { %s5439_s1 = scalar_select %p389_p8, %s5023_s7, %s391_s8  }
  0x8c   : > { %p5445_p2 = scmp.eq.s32.totalorder %s76_s27, 0  ;;  %p6371_p6 = scmp.ne.s32.totalorder %s6357_s11, 0 }
  0x8d   : > { %s5433_s22 = scalar_lea.hbm %s6367_s13, %s5420_s5  ;;  %6369 = sst [smem:[#allocation53_spill]] %s5439_s1 }
  0x8e   : > { %s6370_s3 = scalar_select %p5445_p2, 1, 0 }
  0x8f   : > { %s4605_s0 = scalar_lea.hbm %s5433_s22, 16  ;;  %p5454_p7 = pneg %p6371_p6 }
  0x90   : > { %p4606_p4 = scmp.ne.s32.totalorder %s5433_s22, %s4605_s0  ;;  %s4610_s6 = scalar_lea.hbm %s6367_s13, 32 }
  0x91   : > { %s6372_s29 = scalar_select %p5454_p7, 1, 0 }
  0x92   : > { %p4608_p13 = pnand %p5454_p7, %p4606_p4  ;;  %p4611_p12 = scmp.lt.u32.totalorder %s5433_s22, %s6367_s13 }
  0x93   : > { %p4612_p0 = scmp.lt.u32.totalorder %s4610_s6, %s4605_s0  ;;  %p4614_p1 = scmp.lt.u32.totalorder %s4605_s0, %s5433_s22 }
  0x94   : > { %p4609_p5 = pneg %p4608_p13 }
  0x95   : > { %p4613_p9 = por %p4612_p0, %p4611_p12 }
  0x97   : > { %p4615_p10 = por %p4614_p1, %p4613_p9 }
  0x99   : > { %p4616_p8 = pnand %p4615_p10, %p4609_p5 }
  0x9b   : > { %4619 = shalt.err (!%p4616_p8)
}
  0x9c   : > { %s4620_s25 = scalar_lea.vmem %s5443_s2, 16  ;;  %s5059_s8 = smov [#allocation14]  }
  0x9d   : > { %p4621_p4 = scmp.ne.s32.totalorder %s5443_s2, %s4620_s25  ;;  %s4625_s26 = sshll.u32 %s5059_s8, 4  ;;  %s4626_s26 = int_to_ptr.vmem [resolvable:$false] %s4625_s26 }
  0x9e   : > { %s4627_s30 = scalar_lea.vmem %s4626_s26, 32  ;;  %p4628_p3 = scmp.lt.s32.totalorder %s5443_s2, %s4626_s26 }
  0x9f   : > { %p4623_p13 = pnand %p4621_p4, %p5454_p7  ;;  %p4629_p2 = scmp.lt.s32.totalorder %s4627_s30, %s4620_s25 }
  0xa1   : > { %p4624_p11 = pneg %p4623_p13  ;;  %p4630_p12 = por %p4629_p2, %p4628_p3 }
  0xa3   : > { %p4631_p0 = pnand %p4630_p12, %p4624_p11 }
  0xa5   : > { %4634 = shalt.err (!%p4631_p0)
}
  0xa6   : > { %s6373_s0 = scalar_lea.sflag [#allocation15], %s5334_s28  ;;  %s6374_s6 = sadd.s32 1, %s5035_s4 }
  0xa7   : > { %4372 = dma.hbm_to_vmem [thread:$0]  (!%p6371_p6), %s5433_s22, 16, %s5443_s2, %s6373_s0  }
  0xa8   : > { %p6375_p5 = scmp.ne.s32.totalorder %s6370_s3, 0  ;;  %s6377_s15 = sld [smem:[#allocation71_spill]] }
  0xa9   : > { %s976_s30 = scalar_lea.vmem [#allocation17], %s5417_s20  ;;  %s6296_s1 = scalar_lea.sflag [#allocation18], %s5334_s28 }
  0xaa   : > { %s5484_s25 = scalar_select %p6375_p5, %s5035_s4, %s6374_s6  }
  0xab   : > { %s983_s13 = sshll.u32 %s976_s30, 4  ;;  %s984_s13 = int_to_ptr.vmem [resolvable:$true] %s983_s13 }
  0xac   : > { %6376 = sst [smem:[#allocation54_spill]] %s5484_s25 }
  0xae   : > { %s5490_s26 = scalar_lea.hbm %s6377_s15, %s5420_s5  ;;  %s4640_s3 = scalar_lea.hbm %s6377_s15, 32 }
  0xaf   : > { %s4635_s7 = scalar_lea.hbm %s5490_s26, 16  ;;  %p4641_p9 = scmp.lt.u32.totalorder %s5490_s26, %s6377_s15 }
  0xb0   : > { %p4636_p3 = scmp.ne.s32.totalorder %s5490_s26, %s4635_s7  ;;  %p4642_p1 = scmp.lt.u32.totalorder %s4640_s3, %s4635_s7 }
  0xb1   : > { %p4644_p8 = scmp.lt.u32.totalorder %s4635_s7, %s5490_s26 }
  0xb2   : > { %p4638_p11 = pnand %p4636_p3, %p5454_p7  ;;  %p4643_p10 = por %p4642_p1, %p4641_p9 }
  0xb4   : > { %p4639_p2 = pneg %p4638_p11  ;;  %p4645_p4 = por %p4644_p8, %p4643_p10 }
  0xb6   : > { %p4646_p13 = pnand %p4645_p4, %p4639_p2 }
  0xb8   : > { %4649 = shalt.err (!%p4646_p13)
}
  0xb9   : > { %s4650_s27 = scalar_lea.vmem %s984_s13, 16  ;;  %s5060_s8 = smov [#allocation17]  }
  0xba   : > { %p4651_p12 = scmp.ne.s32.totalorder %s984_s13, %s4650_s27  ;;  %s4655_s30 = sshll.u32 %s5060_s8, 4  ;;  %s4656_s30 = int_to_ptr.vmem [resolvable:$false] %s4655_s30 }
  0xbb   : > { %s4657_s22 = scalar_lea.vmem %s4656_s30, 32  ;;  %p4658_p3 = scmp.lt.s32.totalorder %s984_s13, %s4656_s30 }
  0xbc   : > { %p4653_p0 = pnand %p4651_p12, %p5454_p7  ;;  %p4659_p11 = scmp.lt.s32.totalorder %s4657_s22, %s4650_s27 }
  0xbe   : > { %p4654_p5 = pneg %p4653_p0  ;;  %p4660_p6 = por %p4659_p11, %p4658_p3 }
  0xc0   : > { %p4661_p1 = pnand %p4660_p6, %p4654_p5 }
  0xc2   : > { %4664 = shalt.err (!%p4661_p1)
}
  0xc3   : > { %p6378_p9 = scmp.ne.s32.totalorder %s6357_s11, 0  ;;  %s6379_s17 = sld [smem:[#allocation73_spill]] }
  0xc4   : > { %s1010_s0 = scalar_lea.vmem [#allocation20], %s5417_s20  ;;  %s6297_s27 = scalar_lea.sflag [#allocation21], %s5334_s28 }
  0xc5   : > { %4378 = dma.hbm_to_vmem [thread:$0]  (!%p6378_p9), %s5490_s26, 16, %s984_s13, %s6296_s1  }
  0xc6   : > { %s1017_s6 = sshll.u32 %s1010_s0, 4  ;;  %s1018_s6 = int_to_ptr.vmem [resolvable:$true] %s1017_s6 }
  0xc9   : > { %s5517_s3 = scalar_lea.hbm %s6379_s17, %s5420_s5  ;;  %s4670_s26 = scalar_lea.hbm %s6379_s17, 32 }
  0xca   : > { %s4665_s8 = scalar_lea.hbm %s5517_s3, 16  ;;  %p4671_p8 = scmp.lt.u32.totalorder %s5517_s3, %s6379_s17 }
  0xcb   : > { %p4666_p6 = scmp.ne.s32.totalorder %s5517_s3, %s4665_s8  ;;  %p4672_p4 = scmp.lt.u32.totalorder %s4670_s26, %s4665_s8 }
  0xcc   : > { %p4674_p12 = scmp.lt.u32.totalorder %s4665_s8, %s5517_s3 }
  0xcd   : > { %p4668_p2 = pnand %p4666_p6, %p5454_p7  ;;  %p4673_p13 = por %p4672_p4, %p4671_p8 }
  0xcf   : > { %p4669_p10 = pneg %p4668_p2  ;;  %p4675_p0 = por %p4674_p12, %p4673_p13 }
  0xd1   : > { %p4676_p5 = pnand %p4675_p0, %p4669_p10 }
  0xd3   : > { %4679 = shalt.err (!%p4676_p5)
}
  0xd4   : > { %s4680_s2 = scalar_lea.vmem %s1018_s6, 16  ;;  %s5061_s0 = smov [#allocation20]  }
  0xd5   : > { %p4681_p3 = scmp.ne.s32.totalorder %s1018_s6, %s4680_s2  ;;  %s4685_s1 = sshll.u32 %s5061_s0, 4  ;;  %s4686_s1 = int_to_ptr.vmem [resolvable:$false] %s4685_s1 }
  0xd6   : > { %s4687_s30 = scalar_lea.vmem %s4686_s1, 32  ;;  %p4688_p6 = scmp.lt.s32.totalorder %s1018_s6, %s4686_s1 }
  0xd7   : > { %p4683_p11 = pnand %p4681_p3, %p5454_p7  ;;  %p4689_p2 = scmp.lt.s32.totalorder %s4687_s30, %s4680_s2 }
  0xd9   : > { %p4684_p1 = pneg %p4683_p11  ;;  %p4690_p9 = por %p4689_p2, %p4688_p6 }
  0xdb   : > { %p4691_p4 = pnand %p4690_p9, %p4684_p1 }
  0xdd   : > { %4694 = shalt.err (!%p4691_p4)
}
  0xde   : > { %p6380_p8 = scmp.ne.s32.totalorder %s6357_s11, 0  ;;  %s6381_s26 = sld [smem:[#allocation56_spill]] }
  0xdf   : > { %s792_s1 = scalar_lea.vmem [#allocation5], %s5325_s23  ;;  %s6382_s2 = sand.u32 1, %s5035_s4  }
  0xe0   : > { %4384 = dma.hbm_to_vmem [thread:$0]  (!%p6380_p8), %s5517_s3, 16, %s1018_s6, %s6297_s27  }
  0xe1   : > { %s799_s7 = sshll.u32 %s792_s1, 4  ;;  %s789_s0 = scalar_lea.sflag [#allocation6], %s6382_s2  ;;  %s800_s7 = int_to_ptr.vmem [resolvable:$true] %s799_s7 }
  0xe2   : > { %p6383_p10 = scmp.ne.s32.totalorder %s6358_s21, 0 }
  0xe4   : > { %s5544_s22 = scalar_lea.hbm %s6381_s26, %s5321_s24  ;;  %s4700_s8 = scalar_lea.hbm %s6381_s26, 256 }
  0xe5   : > { %s4695_s30 = scalar_lea.hbm %s5544_s22, 128  ;;  %p4701_p0 = scmp.lt.u32.totalorder %s5544_s22, %s6381_s26 }
  0xe6   : > { %p4696_p9 = scmp.ne.s32.totalorder %s5544_s22, %s4695_s30  ;;  %p4702_p5 = scmp.lt.u32.totalorder %s4700_s8, %s4695_s30 }
  0xe7   : > { %p4704_p11 = scmp.lt.u32.totalorder %s4695_s30, %s5544_s22 }
  0xe8   : > { %p4698_p13 = pnand %p4696_p9, %p6383_p10  ;;  %p4703_p3 = por %p4702_p5, %p4701_p0 }
  0xea   : > { %p4699_p12 = pneg %p4698_p13  ;;  %p4705_p1 = por %p4704_p11, %p4703_p3 }
  0xec   : > { %p4706_p6 = pnand %p4705_p1, %p4699_p12 }
  0xee   : > { %4709 = shalt.err (!%p4706_p6)
}
  0xef   : > { %s4710_s1 = scalar_lea.vmem %s800_s7, 128  ;;  %s5062_s2 = smov [#allocation5]  }
  0xf0   : > { %p4711_p2 = scmp.ne.s32.totalorder %s800_s7, %s4710_s1  ;;  %s4715_s15 = sshll.u32 %s5062_s2, 4  ;;  %s4716_s15 = int_to_ptr.vmem [resolvable:$false] %s4715_s15 }
  0xf1   : > { %s4717_s3 = scalar_lea.vmem %s4716_s15, 256  ;;  %p4718_p13 = scmp.lt.s32.totalorder %s800_s7, %s4716_s15 }
  0xf2   : > { %p4713_p4 = pnand %p4711_p2, %p6383_p10  ;;  %p4719_p8 = scmp.lt.s32.totalorder %s4717_s3, %s4710_s1 }
  0xf4   : > { %p4714_p9 = pneg %p4713_p4  ;;  %p4720_p7 = por %p4719_p8, %p4718_p13 }
  0xf6   : > { %p4721_p0 = pnand %p4720_p7, %p4714_p9 }
  0xf8   : > { %4724 = shalt.err (!%p4721_p0)
}
  0xf9   : > { %p6384_p5 = scmp.ne.s32.totalorder %s6355_s10, 0  ;;  %s6385_s6 = sld [smem:[#allocation58_spill]] }
  0xfa   : > { %s828_s15 = scalar_lea.vmem [#allocation10], %s5325_s23  ;;  %s5574_s1 = sshll.u32 %s5417_s20, 5 }
  0xfb   : > { %4357 = dma.hbm_to_vmem [thread:$0]  (!%p6384_p5), %s5544_s22, 128, %s800_s7, %s789_s0  }
  0xfc   : > { %s835_s13 = sshll.u32 %s828_s15, 4  ;;  %s836_s13 = int_to_ptr.vmem [resolvable:$true] %s835_s13 }
  0xff   : > { %s5570_s8 = scalar_lea.hbm %s6385_s6, %s5321_s24  ;;  %s4730_s0 = scalar_lea.hbm %s6385_s6, 256 }
 0x100   : > { %s4725_s2 = scalar_lea.hbm %s5570_s8, 128  ;;  %p4731_p3 = scmp.lt.u32.totalorder %s5570_s8, %s6385_s6 }
 0x101   : > { %p4726_p7 = scmp.ne.s32.totalorder %s5570_s8, %s4725_s2  ;;  %p4732_p11 = scmp.lt.u32.totalorder %s4730_s0, %s4725_s2 }
 0x102   : > { %p4734_p6 = scmp.lt.u32.totalorder %s4725_s2, %s5570_s8 }
 0x103   : > { %p4728_p8 = pnand %p4726_p7, %p6383_p10  ;;  %p4733_p1 = por %p4732_p11, %p4731_p3 }
 0x105   : > { %p4729_p12 = pneg %p4728_p8  ;;  %p4735_p2 = por %p4734_p6, %p4733_p1 }
 0x107   : > { %p4736_p4 = pnand %p4735_p2, %p4729_p12 }
 0x109   : > { %4739 = shalt.err (!%p4736_p4)
}
 0x10a   : > { %s4740_s23 = scalar_lea.vmem %s836_s13, 128  ;;  %s5063_s27 = smov [#allocation10]  }
 0x10b   : > { %p4741_p9 = scmp.ne.s32.totalorder %s836_s13, %s4740_s23  ;;  %s4745_s30 = sshll.u32 %s5063_s27, 4  ;;  %s4746_s30 = int_to_ptr.vmem [resolvable:$false] %s4745_s30 }
 0x10c   : > { %s4747_s15 = scalar_lea.vmem %s4746_s30, 256  ;;  %p4748_p7 = scmp.lt.s32.totalorder %s836_s13, %s4746_s30 }
 0x10d   : > { %p4743_p13 = pnand %p4741_p9, %p6383_p10  ;;  %p4749_p8 = scmp.lt.s32.totalorder %s4747_s15, %s4740_s23 }
 0x10f   : > { %p4744_p0 = pneg %p4743_p13  ;;  %p4750_p5 = por %p4749_p8, %p4748_p7 }
 0x111   : > { %p4751_p3 = pnand %p4750_p5, %p4744_p0 }
 0x113   : > { %4754 = shalt.err (!%p4751_p3)
}
 0x114   : > { %p6386_p11 = scmp.ne.s32.totalorder %s6355_s10, 0  ;;  %s6387_s2 = scalar_lea.sflag [#allocation9], %s5334_s28 }
 0x115   : > { %s5596_s21 = sshll.u32 %s5047_s9, 9  ;;  %s6388_s12 = sld [smem:[#allocation68_spill]] }
 0x116   : > { %4363 = dma.hbm_to_vmem [thread:$0]  (!%p6386_p11), %s5570_s8, 128, %s836_s13, %s6387_s2  }
 0x117   : > { %s918_s10 = scalar_lea.vmem [#allocation13], %s5574_s1  ;;  %p6389_p5 = scmp.ne.s32.totalorder %s6372_s29, 0 }
 0x118   : > { %s925_s24 = sshll.u32 %s918_s10, 4  ;;  %s5605_s24 = int_to_ptr.vmem [resolvable:$true] %s925_s24 }
 0x11b   : > { %s5602_s0 = scalar_lea.hbm %s6388_s12, %s5596_s21  ;;  %s4760_s23 = scalar_lea.hbm %s6388_s12, 1024 }
 0x11c   : > { %s4755_s3 = scalar_lea.hbm %s5602_s0, 512  ;;  %p4761_p6 = scmp.lt.u32.totalorder %s5602_s0, %s6388_s12 }
 0x11d   : > { %p4756_p10 = scmp.ne.s32.totalorder %s5602_s0, %s4755_s3  ;;  %p4762_p2 = scmp.lt.u32.totalorder %s4760_s23, %s4755_s3 }
 0x11e   : > { %p4764_p9 = scmp.lt.u32.totalorder %s4755_s3, %s5602_s0 }
 0x11f   : > { %p4758_p12 = pnand %p4756_p10, %p6389_p5  ;;  %p4763_p4 = por %p4762_p2, %p4761_p6 }
 0x121   : > { %p4759_p1 = pneg %p4758_p12  ;;  %p4765_p13 = por %p4764_p9, %p4763_p4 }
 0x123   : > { %p4766_p0 = pnand %p4765_p13, %p4759_p1 }
 0x125   : > { %4769 = shalt.err (!%p4766_p0)
}
 0x126   : > { %s4770_s15 = scalar_lea.vmem %s5605_s24, 512  ;;  %s5064_s2 = smov [#allocation13]  }
 0x127   : > { %p4771_p7 = scmp.ne.s32.totalorder %s5605_s24, %s4770_s15  ;;  %s4775_s22 = sshll.u32 %s5064_s2, 4  ;;  %s4776_s22 = int_to_ptr.vmem [resolvable:$false] %s4775_s22 }
 0x128   : > { %s4777_s7 = scalar_lea.vmem %s4776_s22, 1024  ;;  %p4778_p11 = scmp.lt.s32.totalorder %s5605_s24, %s4776_s22 }
 0x129   : > { %p4773_p8 = pnand %p4771_p7, %p6389_p5  ;;  %p4779_p10 = scmp.lt.s32.totalorder %s4777_s7, %s4770_s15 }
 0x12b   : > { %p4774_p3 = pneg %p4773_p8  ;;  %p4780_p12 = por %p4779_p10, %p4778_p11 }
 0x12d   : > { %p4781_p6 = pnand %p4780_p12, %p4774_p3 }
 0x12f   : > { %4784 = shalt.err (!%p4781_p6)
}
 0x130   : > { %s5065_s10 = smov 128   ;;  %s5066_s3 = smov 8  }
 0x131   : > { %p6390_p1 = scmp.ne.s32.totalorder %s6357_s11, 0  ;;  %s6391_s8 = scalar_lea.sflag [#allocation12], %s5334_s28 }
 0x132   : > { %s6392_s14 = sld [smem:[#allocation70_spill]]  ;;  %s956_s30 = scalar_lea.vmem [#allocation16], %s5574_s1 }
 0x133   : > { %4369 = dma.hbm_to_vmem [thread:$0]  (!%p6390_p1), %s5602_s0, 512, %s5605_s24, %s6391_s8, %s5065_s10, %s5065_s10, %s5066_s3  }
 0x134   : > { %s963_s15 = sshll.u32 %s956_s30, 4  ;;  %s5640_s15 = int_to_ptr.vmem [resolvable:$true] %s963_s15 }
 0x138   : > { %s5637_s27 = scalar_lea.hbm %s6392_s14, %s5596_s21  ;;  %s4790_s24 = scalar_lea.hbm %s6392_s14, 1024 }
 0x139   : > { %s4785_s2 = scalar_lea.hbm %s5637_s27, 512  ;;  %p4791_p13 = scmp.lt.u32.totalorder %s5637_s27, %s6392_s14 }
 0x13a   : > { %p4786_p2 = scmp.ne.s32.totalorder %s5637_s27, %s4785_s2  ;;  %p4792_p0 = scmp.lt.u32.totalorder %s4790_s24, %s4785_s2 }
 0x13b   : > { %p4794_p8 = scmp.lt.u32.totalorder %s4785_s2, %s5637_s27 }
 0x13c   : > { %p4788_p4 = pnand %p4786_p2, %p6389_p5  ;;  %p4793_p7 = por %p4792_p0, %p4791_p13 }
 0x13e   : > { %p4789_p9 = pneg %p4788_p4  ;;  %p4795_p3 = por %p4794_p8, %p4793_p7 }
 0x140   : > { %p4796_p11 = pnand %p4795_p3, %p4789_p9 }
 0x142   : > { %4799 = shalt.err (!%p4796_p11)
}
 0x143   : > { %s4800_s13 = scalar_lea.vmem %s5640_s15, 512  ;;  %s5067_s23 = smov [#allocation16]  }
 0x144   : > { %p4801_p10 = scmp.ne.s32.totalorder %s5640_s15, %s4800_s13  ;;  %s4805_s30 = sshll.u32 %s5067_s23, 4  ;;  %s4806_s30 = int_to_ptr.vmem [resolvable:$false] %s4805_s30 }
 0x145   : > { %s4807_s22 = scalar_lea.vmem %s4806_s30, 1024  ;;  %p4808_p2 = scmp.lt.s32.totalorder %s5640_s15, %s4806_s30 }
 0x146   : > { %p4803_p12 = pnand %p4801_p10, %p6389_p5  ;;  %p4809_p4 = scmp.lt.s32.totalorder %s4807_s22, %s4800_s13 }
 0x148   : > { %p4804_p6 = pneg %p4803_p12  ;;  %p4810_p13 = por %p4809_p4, %p4808_p2 }
 0x14a   : > { %p4811_p0 = pnand %p4810_p13, %p4804_p6 }
 0x14c   : > { %4814 = shalt.err (!%p4811_p0)
}
 0x14d   : > { %s6393_s2 = scalar_lea.sflag [#allocation15], %s5334_s28  ;;  %s6394_s16 = sld [smem:[#allocation72_spill]] }
 0x14e   : > { %4375 = dma.hbm_to_vmem [thread:$0]  (!%p6390_p1), %s5637_s27, 512, %s5640_s15, %s6393_s2, %s5065_s10, %s5065_s10, %s5066_s3  }
 0x14f   : > { %s993_s8 = scalar_lea.vmem [#allocation19], %s5417_s20 }
 0x150   : > { %s1000_s13 = sshll.u32 %s993_s8, 4  ;;  %s1001_s13 = int_to_ptr.vmem [resolvable:$true] %s1000_s13 }
 0x153   : > { %s5672_s7 = scalar_lea.hbm %s6394_s16, %s5420_s5  ;;  %s4820_s27 = scalar_lea.hbm %s6394_s16, 32 }
 0x154   : > { %s4815_s23 = scalar_lea.hbm %s5672_s7, 16  ;;  %p4821_p3 = scmp.lt.u32.totalorder %s5672_s7, %s6394_s16 }
 0x155   : > { %p4816_p9 = scmp.ne.s32.totalorder %s5672_s7, %s4815_s23  ;;  %p4822_p11 = scmp.lt.u32.totalorder %s4820_s27, %s4815_s23 }
 0x156   : > { %p4824_p12 = scmp.lt.u32.totalorder %s4815_s23, %s5672_s7 }
 0x157   : > { %p4818_p7 = pnand %p4816_p9, %p6389_p5  ;;  %p4823_p10 = por %p4822_p11, %p4821_p3 }
 0x159   : > { %p4819_p8 = pneg %p4818_p7  ;;  %p4825_p6 = por %p4824_p12, %p4823_p10 }
 0x15b   : > { %p4826_p2 = pnand %p4825_p6, %p4819_p8 }
 0x15d   : > { %4829 = shalt.err (!%p4826_p2)
}
 0x15e   : > { %s4830_s0 = scalar_lea.vmem %s1001_s13, 16  ;;  %s5068_s24 = smov [#allocation19]  }
 0x15f   : > { %p4831_p4 = scmp.ne.s32.totalorder %s1001_s13, %s4830_s0  ;;  %s4835_s8 = sshll.u32 %s5068_s24, 4  ;;  %s4836_s8 = int_to_ptr.vmem [resolvable:$false] %s4835_s8 }
 0x160   : > { %s4837_s30 = scalar_lea.vmem %s4836_s8, 32  ;;  %p4838_p9 = scmp.lt.s32.totalorder %s1001_s13, %s4836_s8 }
 0x161   : > { %p4833_p13 = pnand %p4831_p4, %p6389_p5  ;;  %p4839_p7 = scmp.lt.s32.totalorder %s4837_s30, %s4830_s0 }
 0x163   : > { %p4834_p0 = pneg %p4833_p13  ;;  %p4840_p1 = por %p4839_p7, %p4838_p9 }
 0x165   : > { %p4841_p3 = pnand %p4840_p1, %p4834_p0 }
 0x167   : > { %4844 = shalt.err (!%p4841_p3)
}
 0x168   : > { %p6395_p11 = scmp.ne.s32.totalorder %s6357_s11, 0  ;;  %s6396_s23 = scalar_lea.sflag [#allocation18], %s5334_s28 }
 0x169   : > { %s6397_s18 = sld [smem:[#allocation74_spill]]  ;;  %s1028_s2 = scalar_lea.vmem [#allocation22], %s5574_s1 }
 0x16a   : > { %4381 = dma.hbm_to_vmem [thread:$0]  (!%p6395_p11), %s5672_s7, 16, %s1001_s13, %s6396_s23  }
 0x16b   : > { %s1035_s0 = sshll.u32 %s1028_s2, 4  ;;  %s5701_s0 = int_to_ptr.vmem [resolvable:$true] %s1035_s0 }
 0x16f   : > { %s5698_s15 = scalar_lea.hbm %s6397_s18, %s5596_s21  ;;  %s4850_s13 = scalar_lea.hbm %s6397_s18, 1024 }
 0x170   : > { %s4845_s24 = scalar_lea.hbm %s5698_s15, 512  ;;  %p4851_p12 = scmp.lt.u32.totalorder %s5698_s15, %s6397_s18 }
 0x171   : > { %p4846_p1 = scmp.ne.s32.totalorder %s5698_s15, %s4845_s24  ;;  %p4852_p6 = scmp.lt.u32.totalorder %s4850_s13, %s4845_s24 }
 0x172   : > { %p4854_p4 = scmp.lt.u32.totalorder %s4845_s24, %s5698_s15 }
 0x173   : > { %p4848_p8 = pnand %p4846_p1, %p6389_p5  ;;  %p4853_p2 = por %p4852_p6, %p4851_p12 }
 0x175   : > { %p4849_p10 = pneg %p4848_p8  ;;  %p4855_p13 = por %p4854_p4, %p4853_p2 }
 0x177   : > { %p4856_p0 = pnand %p4855_p13, %p4849_p10 }
 0x179   : > { %4859 = shalt.err (!%p4856_p0)
}
 0x17a   : > { %s4860_s1 = scalar_lea.vmem %s5701_s0, 512  ;;  %s5069_s23 = smov [#allocation22]  }
 0x17b   : > { %p4861_p9 = scmp.ne.s32.totalorder %s5701_s0, %s4860_s1  ;;  %s4865_s22 = sshll.u32 %s5069_s23, 4  ;;  %s4866_s22 = int_to_ptr.vmem [resolvable:$false] %s4865_s22 }
 0x17c   : > { %s4867_s27 = scalar_lea.vmem %s4866_s22, 1024  ;;  %p4868_p1 = scmp.lt.s32.totalorder %s5701_s0, %s4866_s22 }
 0x17d   : > { %p4863_p7 = pnand %p4861_p9, %p6389_p5  ;;  %p4869_p8 = scmp.lt.s32.totalorder %s4867_s27, %s4860_s1 }
 0x17f   : > { %p4864_p3 = pneg %p4863_p7  ;;  %p4870_p12 = por %p4869_p8, %p4868_p1 }
 0x181   : > { %p4871_p6 = pnand %p4870_p12, %p4864_p3 }
 0x183   : > { %4874 = shalt.err (!%p4871_p6)
}
 0x184   : > { %s6398_s2 = scalar_lea.sflag [#allocation21], %s5334_s28  ;;  %s6399_s19 = sld [smem:[#allocation75_spill]] }
 0x185   : > { %4387 = dma.hbm_to_vmem [thread:$0]  (!%p6395_p11), %s5698_s15, 512, %s5701_s0, %s6398_s2, %s5065_s10, %s5065_s10, %s5066_s3  }
 0x186   : > { %s1048_s13 = scalar_lea.vmem [#allocation23], %s5417_s20  ;;  %s1046_s28 = scalar_lea.sflag [#allocation24], %s5417_s20 }
 0x187   : > { %s1055_s30 = sshll.u32 %s1048_s13, 4  ;;  %s1056_s30 = int_to_ptr.vmem [resolvable:$true] %s1055_s30 }
 0x18a   : > { %s5733_s7 = scalar_lea.hbm %s6399_s19, %s5420_s5  ;;  %s4880_s3 = scalar_lea.hbm %s6399_s19, 32 }
 0x18b   : > { %s4875_s21 = scalar_lea.hbm %s5733_s7, 16  ;;  %p4881_p13 = scmp.lt.u32.totalorder %s5733_s7, %s6399_s19 }
 0x18c   : > { %p4876_p10 = scmp.ne.s32.totalorder %s5733_s7, %s4875_s21  ;;  %p4882_p0 = scmp.lt.u32.totalorder %s4880_s3, %s4875_s21 }
 0x18d   : > { %p4884_p7 = scmp.lt.u32.totalorder %s4875_s21, %s5733_s7 }
 0x18e   : > { %p4878_p2 = pnand %p4876_p10, %p6389_p5  ;;  %p4883_p9 = por %p4882_p0, %p4881_p13 }
 0x190   : > { %p4879_p4 = pneg %p4878_p2  ;;  %p4885_p3 = por %p4884_p7, %p4883_p9 }
 0x192   : > { %p4886_p1 = pnand %p4885_p3, %p4879_p4 }
 0x194   : > { %4889 = shalt.err (!%p4886_p1)
}
 0x195   : > { %s4890_s20 = scalar_lea.vmem %s1056_s30, 16  ;;  %s5070_s0 = smov [#allocation23]  }
 0x196   : > { %p4891_p8 = scmp.ne.s32.totalorder %s1056_s30, %s4890_s20  ;;  %s4895_s23 = sshll.u32 %s5070_s0, 4  ;;  %s4896_s23 = int_to_ptr.vmem [resolvable:$false] %s4895_s23 }
 0x197   : > { %s4897_s22 = scalar_lea.vmem %s4896_s23, 32  ;;  %p4898_p10 = scmp.lt.s32.totalorder %s1056_s30, %s4896_s23 }
 0x198   : > { %p4893_p12 = pnand %p4891_p8, %p6389_p5  ;;  %p4899_p2 = scmp.lt.s32.totalorder %s4897_s22, %s4890_s20 }
 0x19a   : > { %p4894_p6 = pneg %p4893_p12  ;;  %p4900_p11 = por %p4899_p2, %p4898_p10 }
 0x19c   : > { %p4901_p0 = pnand %p4900_p11, %p4894_p6 }
 0x19e   : > { %4904 = shalt.err (!%p4901_p0)
}
 0x19f   : > { %p6400_p13 = scmp.ne.s32.totalorder %s6357_s11, 0  ;;  %s6401_s27 = sld [smem:[#allocation50_spill]] }
 0x1a1   : > { %4390 = dma.hbm_to_vmem [thread:$0]  (!%p6400_p13), %s5733_s7, 16, %s1056_s30, %s1046_s28  }
 0x1a5   : > { %p6402_p4 = scmp.ne.s32.totalorder %s6401_s27, 0 }
 0x1a7   : > { %1090 = sbr.rel (%p6402_p4) target bundleno = 5087 (0x13df), region = 124 }
 0x1ae   : > { %s6403_s2 = sld [smem:[#allocation38_spill]]  ;;  %s6404_s29 = sld [smem:[#allocation46_spill]] }
 0x1b4   : > { %s5757_s24 = sand.u32 1, %s6403_s2   ;;  %p6406_p5 = scmp.ne.s32.totalorder %s6404_s29, 0 }
 0x1b5   : > { %6405 = sst [smem:[#allocation55_spill]] %s5757_s24  ;;  %s5760_s8 = sshll.u32 %s5757_s24, 3 }
 0x1b6   : > { %s1093_s13 = scalar_lea.sflag [#allocation6], %s5757_s24 }
 0x1b7   : > { %4978 = dma.done.wait (%p6406_p5), %s1093_s13, 128  }
 0x1b8   : > { %4980 = vsyncadd (%p6406_p5), %s1093_s13, 4294967168  ;;  %s6407_s11 = sld [smem:[#allocation45_spill]] }
 0x1be   : > { %s1101_s7 = sand.u32 1, %s6407_s11  }
 0x1bf   : > { %s1102_s30 = scalar_lea.sflag [#allocation9], %s1101_s7 }
 0x1c0   : > { %4982 = dma.done.wait (%p6406_p5), %s1102_s30, 256  }
 0x1c1   : > { %4984 = vsyncadd (%p6406_p5), %s1102_s30, 4294967040  ;;  %s1120_s10 = scalar_lea.sflag [#allocation12], %s1101_s7 }
 0x1c2   : > { %4986 = dma.done.wait (%p6406_p5), %s1120_s10, 128  }
 0x1c3   : > { %4988 = vsyncadd (%p6406_p5), %s1120_s10, 4294967168  ;;  %s6408_s15 = sld [smem:[#allocation35_spill]] }
 0x1c4   : > { %s6409_s5 = sld [smem:[#allocation47_spill]] }
 0x1c9   : > { %s5781_s20 = sand.u32 1, %s6408_s15  }
 0x1ca   : > { %s3973_s0 = sshll.u32 %s5781_s20, 5  ;;  %p6410_p11 = scmp.ne.s32.totalorder %s6409_s5, 0 }
 0x1cb   : > { %s5784_s23 = scalar_lea.vmem [#allocation13], %s3973_s0 }
 0x1cc   : > { %4990 = dma.done.wait (%p6410_p11), %s1120_s10, 512  }
 0x1cd   : > { %4992 = vsyncadd (%p6410_p11), %s1120_s10, 4294966784  ;;  %s1138_s22 = scalar_lea.sflag [#allocation15], %s1101_s7 }
 0x1ce   : > { %4994 = dma.done.wait (%p6410_p11), %s1138_s22, 528  }
 0x1cf   : > { %4996 = vsyncadd (%p6410_p11), %s1138_s22, 4294966768  ;;  %s5795_s2 = scalar_lea.vmem [#allocation16], %s3973_s0  ;;  %s1155_s29 = scalar_lea.sflag [#allocation18], %s1101_s7 }
 0x1d0   : > { %4998 = dma.done.wait (%p6410_p11), %s1155_s29, 32  }
 0x1d1   : > { %5000 = vsyncadd (%p6410_p11), %s1155_s29, 4294967264  ;;  %s1171_s30 = scalar_lea.sflag [#allocation21], %s1101_s7 }
 0x1d2   : > { %5002 = dma.done.wait (%p6410_p11), %s1171_s30, 528  }
 0x1d3   : > { %5004 = vsyncadd (%p6410_p11), %s1171_s30, 4294966768  ;;  %s5808_s15 = scalar_lea.vmem [#allocation22], %s3973_s0  ;;  %s1188_s22 = scalar_lea.sflag [#allocation24], %s5781_s20 }
 0x1d4   : > { %5006 = dma.done.wait (%p6410_p11), %s1188_s22, 16  }
 0x1d5   : > { %5008 = vsyncadd (%p6410_p11), %s1188_s22, 4294967280  ;;  %s6411_s29 = sld [smem:[#allocation40_spill]]  ;;  %s6413_s27 = sld [smem:[#allocation60_spill]] }
 0x1d6   : > { %s6414_s21 = sld [smem:[#allocation62_spill]]  ;;  %s6418_s10 = sld [smem:[#allocation66_spill]] }
 0x1d7   : > { %s6419_s3 = sld [smem:[#allocation67_spill]]  ;;  %s6420_s16 = sld [smem:[#allocation76_spill]] }
 0x1d8   : > { %s6421_s26 = sld [smem:[#allocation77_spill]]  ;;  %s6422_s13 = sld [smem:[#allocation78_spill]] }
 0x1d9   : > { %s1352_s1 = scalar_lea.vmem [#allocation25], %s5760_s8 }
 0x1db   : > { %p1353_p9 = scmp.lt.s32.totalorder %s6411_s29, 1  ;;  %p3985_p7 = scmp.ne.s32.totalorder %s6411_s29, 0 }
 0x1dc   : > { %vm1402_vm0 = vcmask (!%p3985_p7), 261120   ;;  %vm1407_vm1 = vcmask (!%p3985_p7), 64512   ;;  %v5071_v3 = vmov (!%p3985_p7), 0.0  }
 0x1dd   : > { %s5818_s7 = scalar_select %p1353_p9, %s6411_s29, 1 }
 0x1df   : > { %s4040_s0 = sshll.u32 %s5818_s7, 5  ;;  %s1382_s4 = scalar_lea.vmem %s6419_s3, %s5818_s7 }
 0x1e0   : > { %s5828_s28 = scalar_lea.vmem %s6413_s27, %s4040_s0  ;;  %s5833_s6 = scalar_lea.vmem %s6414_s21, %s4040_s0 }
 0x1e1   : > { %s5850_s25 = scalar_lea.vmem %s6418_s10, %s4040_s0  ;;  %s4043_s24 = sshll.u32 %s5818_s7, 6 }
 0x1e2   : > { %s5860_s17 = scalar_lea.vmem %s6420_s16, %s4043_s24  ;;  %s1390_s30 = scalar_lea.vmem %s6421_s26, %s5818_s7 }
 0x1e3   : > { %s1393_s11 = scalar_lea.vmem %s6422_s13, %s5818_s7  ;;  %s6423_s10 = sld [smem:[#allocation79_spill]] }
 0x1e4   : > { %1400 = sbr.rel (%p3985_p7) target bundleno = 491 (0x1eb), region = 176  ;;  %s6424_s21 = scalar_lea.vmem (!%p3985_p7), [#allocation5], %s5760_s8 }
 0x1e5   : > { %v1401_v0 = vld [vmem:[%s6424_s21] sm:$0xff] (!%p3985_p7)  ;;  %s6425_s24 = scalar_lea.vmem (!%p3985_p7), [#allocation10], %s5760_s8  ;;  %s6426_s3 = scalar_lea.vmem (!%p3985_p7), [#allocation11], %s5760_s8 }
 0x1e6   : > { %v1404_v1 = vld [vmem:[%s6425_s24] sm:$0xff] (!%p3985_p7)  ;;  %v1409_v2 = vld [vmem:[%s6426_s3] sm:$0xff] (!%p3985_p7)  ;;  %1403 = vst.msk [vmem:[#allocation2] sm:$0xff] (!%p3985_p7), %vm1402_vm0, %v1401_v0 }
 0x1e7   : > { %vm1405_vm2 = vcmp.lt.f32.partialorder (!%p3985_p7), %v1404_v1, 0.5  ;;  %vm1410_vm3 = vcmp.lt.f32.partialorder (!%p3985_p7), %v1409_v2, 0.5 }
 0x1e8   : > { %v1406_v4 = vsel (!%p3985_p7), %vm1405_vm2, -1e+09, %v5071_v3  ;;  %v1411_v5 = vsel (!%p3985_p7), %vm1410_vm3, -1e+09, %v5071_v3 }
 0x1e9   : > { %s1396_s9 = scalar_lea.vmem %s6423_s10, %s5818_s7  ;;  %1408 = vst.msk [vmem:[#allocation3] sm:$0xff] (!%p3985_p7), %vm1407_vm1, %v1406_v4  ;;  %1412 = vst.msk [vmem:[#allocation4] sm:$0xff] (!%p3985_p7), %vm1407_vm1, %v1411_v5 }
 0x1eb PF: > { %v1417_v6 = vld [vmem:[%s5828_s28] sm:$0xff]  ;;  %v1418_v7 = vld [vmem:[%s5828_s28 + $0x8] sm:$0xff]  ;;  %v1419_v8 = vld [vmem:[%s5828_s28 + $0x10] sm:$0xff]  ;;  %v5072_v9 = vmov 0.0|0.0   ;;  %vm5073_vm4 = vmmov 0   ;;  %v5074_v12 = vmov 0.0  }
 0x1ec   : > { %4280 = vmatprep.subr.bf16.mxu1 %v5072_v9  ;;  %v4281_v10 = vpack.c.bf16 %v1418_v7, %v1417_v6  ;;  %v1420_v11 = vld [vmem:[%s5828_s28 + $0x18] sm:$0xff]  ;;  %4123 = vmatprep.mubr.msk.f32.mxu1 %vm5073_vm4, %v5074_v12  ;;  %vm1428_vm5 = vcmask 261120   ;;  %s6427_s29 = sld [smem:[#allocation61_spill]]  ;;  %s5075_s14 = smov 120   ;;  %vm1505_vm6 = vcmask 64512   ;;  %vm2183_vm7 = vcmask 130048  }
 0x1ed   : > { %4136 = vmatprep.subr.mxu0 %v5074_v12  ;;  %4138 = vmatprep.mubr.msk.f32.mxu0 %vm5073_vm4, %v5074_v12  ;;  %v4284_v13 = vpack.c.bf16 %v1420_v11, %v1419_v8  ;;  %v5893_v14 = vld [vmem:[#allocation2] sm:$0xff]  ;;  %s5076_s16 = smov 96   ;;  %s5077_s18 = smov 80   ;;  %vm2185_vm8 = vcmask 195584   ;;  %vm3365_vm9 = vcmask 523264  }
 0x1ee   : > { %4282 = vmatpush3.bf16.msra.mxu1 %v4281_v10  ;;  %s5078_s19 = smov 88   ;;  %s5079_s26 = smov 72  }
 0x1ef   : > { %4283 = vmatprep.subr.bf16.mxu1 %v5072_v9  ;;  %s5080_s5 = smov 112   ;;  %s5081_s22 = smov 104  }
 0x1f0   : > { %v1415_v27 = vld [vmem:[#allocation3] sm:$0xff]  ;;  %s5082_s0 = smov 56   ;;  %s5083_s27 = smov 64  }
 0x1f1   : > { %s5084_s10 = smov 48   ;;  %s5085_s21 = smov 40  }
 0x1f2   : > { %4285 = vmatpush3.bf16.msra.mxu1 %v4284_v13  ;;  %s6428_s12 = scalar_lea.vmem %s6427_s29, %s5818_s7  ;;  %s5086_s24 = smov 8  }
 0x1f3   : > { %4126 = vmatprep.subr.mxu1 %v5074_v12  ;;  %v3986_v15 = vld [vmem:[%s6428_s12] ss:$0 sm:$0xff]  ;;  %s5087_s3 = smov 16   ;;  %s5088_s28 = smov 24  }
 0x1f4   : > { %s6429_s29 = sld [smem:[#allocation63_spill]]  ;;  %s6434_s13 = sld [smem:[#allocation65_spill]] }
 0x1f5   : > { %4124 = vmatmul.mubr.msk.f32.vlgmr.msra.gmra.mrb[0].mxu1 %vm1428_vm5, %v5893_v14 }
 0x1f6   : > { %4128 = vmatprep.mubr.msk.f32.mxu1 %vm5073_vm4, %v5074_v12 }
 0x1fa   : > { %s6430_s12 = scalar_lea.vmem %s6429_s29, %s5818_s7  ;;  %s6435_s29 = scalar_lea.vmem %s6434_s13, %s5818_s7 }
 0x2c8   : > { %v1498_v16 = vpop.f32.mrb[0].mxu1 }
 0x2c9   : > { %v5905_v17 = vadd.f32 %v3986_v15, %v1498_v16  ;;  %v4125_v18 = vpop.f32.mrb[1].mxu1 }
 0x2cb   : > { %1669 = vrot.lane.b32.xlu1 %v5905_v17, %s5075_s14  ;;  %1503 = vrot.lane.b32.xlu0 %v5905_v17, %s5076_s16 }
 0x2cf   : > { %1838 = vrot.lane.b32.xlu1 %v5905_v17, %s5077_s18  ;;  %1671 = vrot.lane.b32.xlu0 %v5905_v17, %s5078_s19 }
 0x2d3   : > { %2005 = vrot.lane.b32.xlu1 %v5905_v17, %s5079_s26  ;;  %1836 = vrot.lane.b32.xlu0 %v5905_v17, %s5080_s5 }
 0x2d7   : > { %2003 = vrot.lane.b32.xlu0 %v5905_v17, %s5081_s22 }
 0x33d   : > { %v1670_v19 = vpop.permute.xlu1 %1669  ;;  %v1504_v20 = vpop.permute.xlu0 %1503 }
 0x33e   : > { %4127 = vmatpush3.xpose.msk.msra.mxu1 %vm1505_vm6, %v1504_v20 }
 0x33f   : > { %4131 = vmatprep.subr.mxu1 %v5074_v12 }
 0x341   : > { %4129 = vmatmul.mubr.msk.f32.vlgmr.msra.gmra.mrb[2].mxu1 %vm1505_vm6, %v5905_v17  ;;  %v1672_v21 = vpop.permute.xlu0 %1671  ;;  %v1839_v22 = vpop.permute.xlu1 %1838 }
 0x342   : > { %4137 = vmatpush3.xpose.msk.msra.mxu0 %vm1505_vm6, %v1672_v21  ;;  %4133 = vmatprep.mubr.msk.f32.mxu1 %vm5073_vm4, %v5074_v12 }
 0x343   : > { %4146 = vmatprep.subr.mxu0 %v5074_v12 }
 0x345   : > { %4139 = vmatmul.mubr.msk.f32.vlgmr.msra.gmra.mrb[0].mxu0 %vm1505_vm6, %v1670_v19  ;;  %v1837_v23 = vpop.permute.xlu0 %1836  ;;  %v2006_v24 = vpop.permute.xlu1 %2005 }
 0x346   : > { %4147 = vmatpush3.xpose.msk.msra.mxu0 %vm1505_vm6, %v1839_v22  ;;  %4148 = vmatprep.mubr.msk.f32.mxu0 %vm5073_vm4, %v5074_v12  ;;  %v2187_v22 = vld [vmem:[%s5833_s6] sm:$0xff] }
 0x347   : > { %4156 = vmatprep.subr.mxu0 %v5074_v12 }
 0x349   : > { %4149 = vmatmul.mubr.msk.f32.vlgmr.msra.gmra.mrb[2].mxu0 %vm1505_vm6, %v1837_v23  ;;  %v2004_v25 = vpop.permute.xlu0 %2003  ;;  %v2188_v23 = vld [vmem:[%s5833_s6 + $0x8] sm:$0xff] }
 0x34a   : > { %4157 = vmatpush3.xpose.msk.msra.mxu0 %vm1505_vm6, %v2006_v24  ;;  %4158 = vmatprep.mubr.msk.f32.mxu0 %vm5073_vm4, %v5074_v12  ;;  %v4287_v24 = vpack.c.bf16 %v2188_v23, %v2187_v22 }
 0x34b   : > { %4286 = vmatprep.subr.bf16.mxu0 %v5072_v9 }
 0x34d   : > { %4159 = vmatmul.mubr.msk.f32.vlgmr.msra.gmra.mrb[4].mxu0 %vm1505_vm6, %v2004_v25 }
 0x34e   : > { %4174 = vmatprep.mubr.msk.f32.mxu0 %vm5073_vm4, %v5074_v12  ;;  %4288 = vmatpush3.bf16.msra.mxu0 %v4287_v24 }
 0x34f   : > { %4289 = vmatprep.subr.bf16.mxu0 %v5072_v9 }
 0x414   : > { %v1576_v26 = vpop.f32.mrb[2].mxu1 }
 0x415   : > { %v1580_v28 = vmul.f32 0.35355338, %v1576_v26  ;;  %v4130_v29 = vpop.f32.mrb[3].mxu1 }
 0x416   : > { %v2189_v29 = vld [vmem:[%s5833_s6 + $0x10] sm:$0xff] }
 0x417   : > { %v1581_v30 = vadd.f32 %v1580_v28, %v1415_v27 }
 0x418   : > { %v1743_v31 = vpop.f32.mrb[0].mxu0 }
 0x419   : > { %v1747_v32 = vmul.f32 0.35355338, %v1743_v31  ;;  %v4140_v33 = vpop.f32.mrb[1].mxu0  ;;  %v1582_v34 = vsel %vm1505_vm6, %v1581_v30, -inf }
 0x41a   : > { %1583 = vmax.xlane.f32.xlu1 %v1582_v34 }
 0x41b   : > { %v1748_v35 = vadd.f32 %v1747_v32, %v1415_v27 }
 0x41c   : > { %v1910_v36 = vpop.f32.mrb[2].mxu0 }
 0x41d   : > { %v1914_v37 = vmul.f32 0.35355338, %v1910_v36  ;;  %v4150_v38 = vpop.f32.mrb[3].mxu0  ;;  %v1749_v39 = vsel %vm1505_vm6, %v1748_v35, -inf }
 0x41e   : > { %1750 = vmax.xlane.f32.xlu0 %v1749_v39 }
 0x41f   : > { %v1915_v40 = vadd.f32 %v1914_v37, %v1415_v27 }
 0x420   : > { %v2077_v41 = vpop.f32.mrb[4].mxu0 }
 0x421   : > { %v2081_v42 = vmul.f32 0.35355338, %v2077_v41  ;;  %v4160_v43 = vpop.f32.mrb[5].mxu0  ;;  %v1916_v44 = vsel %vm1505_vm6, %v1915_v40, -inf }
 0x422   : > { %1917 = vmax.xlane.f32.xlu0 %v1916_v44 }
 0x423   : > { %v2082_v45 = vadd.f32 %v2081_v42, %v1415_v27  ;;  %v4000_v42 = vld [vmem:[%s6430_s12] ss:$0 sm:$0xff]  ;;  %s6436_s12 = scalar_lea.vmem [#allocation14], %s5781_s20 }
 0x425   : > { %v2083_v46 = vsel %vm1505_vm6, %v2082_v45, -inf }
 0x426   : > { %2084 = vmax.xlane.f32.xlu1 %v2083_v46 }
 0x437   : > { %1760 = vrot.lane.b32.xlu1 %v5905_v17, %s5082_s0  ;;  %s6431_s0 = scalar_lea.vmem [#allocation8], %s5760_s8 }
 0x4a7   : > { %v1584_v47 = vpop.xlane.xlu1 %1583 }
 0x4a8   : > { %v1585_v48 = vsub.f32 %v1581_v30, %v1584_v47  ;;  %v2190_v30 = vld [vmem:[%s5833_s6 + $0x18] sm:$0xff] }
 0x4a9   : > { %v4290_v31 = vpack.c.bf16 %v2190_v30, %v2189_v29 }
 0x4aa   : > { %v1586_v49 = vmul.f32 1.442695, %v1585_v48 }
 0x4ab   : > { %v1751_v50 = vpop.xlane.xlu0 %1750  ;;  %4291 = vmatpush3.bf16.msra.mxu0 %v4290_v31 }
 0x4ac   : > { %4505 = vpow2.f32 %v1586_v49  ;;  %v1752_v51 = vsub.f32 %v1748_v35, %v1751_v50  ;;  %4298 = vmatprep.subr.bf16.mxu0 %v5072_v9 }
 0x4ae   : > { %v1753_v52 = vmul.f32 1.442695, %v1752_v51 }
 0x4af   : > { %v1918_v62 = vpop.xlane.xlu0 %1917 }
 0x4b0   : > { %4507 = vpow2.f32 %v1753_v52  ;;  %v1919_v63 = vsub.f32 %v1915_v40, %v1918_v62  ;;  %v2304_v62 = vld [vmem:[%s5850_s25 + $0x10] sm:$0xff] }
 0x4b2   : > { %v1920_v0 = vmul.f32 1.442695, %v1919_v63  ;;  %v2305_v63 = vld [vmem:[%s5850_s25 + $0x18] sm:$0xff] }
 0x4b3   : > { %v2085_v53 = vpop.xlane.xlu1 %2084 }
 0x4b4   : > { %v2086_v54 = vsub.f32 %v2082_v45, %v2085_v53  ;;  %v2386_v53 = vld [vmem:[%s5784_s23] sm:$0xff] }
 0x4b6   : > { %v4506_v55 = vpop.eup %4505  ;;  %v2087_v56 = vmul.f32 1.442695, %v2086_v54  ;;  %v2387_v54 = vld [vmem:[%s5784_s23 + $0x8] sm:$0xff] }
 0x4b7   : > { %v1588_v57 = vsel %vm1505_vm6, %v4506_v55, 0.0  ;;  %v1761_v3 = vpop.permute.xlu1 %1760 }
 0x4b8   : > { %4509 = vpow2.f32 %v2087_v56  ;;  %1589 = vadd.xlane.f32.xlu0 %v1588_v57  ;;  %v2389_v56 = vld [vmem:[%s5784_s23 + $0x18] sm:$0xff] }
 0x4b9   : > { %4511 = vpow2.f32 %v1920_v0  ;;  %v4296_v0 = vpack.c.bf16 %v2305_v63, %v2304_v62 }
 0x4ba   : > { %v4508_v58 = vpop.eup %4507 }
 0x4bb   : > { %v1755_v59 = vsel %vm1505_vm6, %v4508_v58, 0.0 }
 0x4bc   : > { %1756 = vadd.xlane.f32.xlu1 %v1755_v59  ;;  %v2302_v59 = vld [vmem:[%s5850_s25] sm:$0xff] }
 0x4c2   : > { %v4510_v60 = vpop.eup %4509 }
 0x4c3   : > { %v2089_v61 = vsel %vm1505_vm6, %v4510_v60, 0.0  ;;  %v4512_v1 = vpop.eup %4511 }
 0x4c4   : > { %2090 = vadd.xlane.f32.xlu1 %v2089_v61  ;;  %v1922_v2 = vsel %vm1505_vm6, %v4512_v1, 0.0 }
 0x4ce   : > { %1593 = vrot.lane.b32.xlu0 %v5905_v17, %s5083_s27 }
 0x4d5   : > { %1927 = vrot.lane.b32.xlu1 %v5905_v17, %s5084_s10  ;;  %s6432_s10 = sld [smem:[#allocation64_spill]] }
 0x4ed   : > { %1923 = vadd.xlane.f32.xlu0 %v1922_v2 }
 0x503   : > { %2094 = vrot.lane.b32.xlu0 %v5905_v17, %s5085_s21  ;;  %s6433_s21 = scalar_lea.vmem %s6432_s10, %s5818_s7 }
 0x545   : > { %v1590_v4 = vpop.xlane.xlu0 %1589 }
 0x546   : > { %4513 = vrcp.f32 %v1590_v4 }
 0x549   : > { %v1594_v5 = vpop.permute.xlu0 %1593  ;;  %v1757_v6 = vpop.xlane.xlu1 %1756 }
 0x54a   : > { %4515 = vrcp.f32 %v1757_v6  ;;  %4132 = vmatpush3.msra.mxu1 %v1594_v5  ;;  %v4002_v5 = vld [vmem:[%s6433_s21] ss:$0 sm:$0xff] }
 0x54b   : > { %4141 = vmatprep.subr.mxu1 %v5074_v12 }
 0x550   : > { %v4514_v7 = vpop.eup %4513 }
 0x551   : > { %v1592_v8 = vmul.f32 %v4514_v7, %v4506_v55  ;;  %v2091_v10 = vpop.xlane.xlu1 %2090  ;;  %v4299_v55 = vpack.c.bf16 %v2387_v54, %v2386_v53  ;;  %v4003_v7 = vld [vmem:[%s6435_s29] ss:$0 sm:$0xff] }
 0x553   : > { %4134 = vmatmul.mubr.msk.f32.vlgmr.msra.gmra.mrb[4].mxu1 %vm1505_vm6, %v1592_v8 }
 0x554   : > { %v4516_v11 = vpop.eup %4515  ;;  %4142 = vmatpush3.msra.mxu1 %v1761_v3  ;;  %4143 = vmatprep.mubr.msk.f32.mxu1 %vm5073_vm4, %v5074_v12 }
 0x555   : > { %v1759_v13 = vmul.f32 %v4516_v11, %v4508_v58  ;;  %v1928_v15 = vpop.permute.xlu1 %1927  ;;  %4151 = vmatprep.subr.mxu1 %v5074_v12  ;;  %v1414_v58 = vld [vmem:[%s6431_s0] sm:$0xff]  ;;  %v4006_v11 = vld [vmem:[%s6436_s12] ss:$0 sm:$0xff] }
 0x557   : > { %4144 = vmatmul.mubr.msk.f32.vlgmr.msra.gmra.mrb[6].mxu1 %vm1505_vm6, %v1759_v13 }
 0x558   : > { %4152 = vmatpush3.msra.mxu1 %v1928_v15  ;;  %4153 = vmatprep.mubr.msk.f32.mxu1 %vm5073_vm4, %v5074_v12 }
 0x559   : > { %4161 = vmatprep.subr.mxu1 %v5074_v12 }
 0x57a   : > { %v1924_v16 = vpop.xlane.xlu0 %1923 }
 0x57b   : > { %4517 = vrcp.f32 %v1924_v16 }
 0x57c   : > { %4519 = vrcp.f32 %v2091_v10 }
 0x57e   : > { %v2095_v20 = vpop.permute.xlu0 %2094 }
 0x585   : > { %v4518_v17 = vpop.eup %4517 }
 0x586   : > { %v1926_v18 = vmul.f32 %v4518_v17, %v4512_v1  ;;  %v4520_v19 = vpop.eup %4519 }
 0x587   : > { %v2093_v21 = vmul.f32 %v4520_v19, %v4510_v60  ;;  %v2303_v60 = vld [vmem:[%s5850_s25 + $0x8] sm:$0xff] }
 0x588   : > { %4154 = vmatmul.mubr.msk.f32.vlgmr.msra.gmra.mrb[8].mxu1 %vm1505_vm6, %v1926_v18  ;;  %v4293_v61 = vpack.c.bf16 %v2303_v60, %v2302_v59  ;;  %v4004_v18 = vld [vmem:[%s1382_s4] ss:$0 sm:$0xff]  ;;  %s6438_s4 = scalar_lea.vmem [#allocation17], %s5781_s20 }
 0x589   : > { %4162 = vmatpush3.msra.mxu1 %v2095_v20  ;;  %4163 = vmatprep.mubr.msk.f32.mxu1 %vm5073_vm4, %v5074_v12 }
 0x58a   : > { %4292 = vmatprep.subr.bf16.mxu1 %v5072_v9 }
 0x58c   : > { %4164 = vmatmul.mubr.msk.f32.vlgmr.msra.gmra.mrb[10].mxu1 %vm1505_vm6, %v2093_v21 }
 0x58d   : > { %4185 = vmatprep.mubr.msk.f32.mxu1 %vm5073_vm4, %v5074_v12  ;;  %4294 = vmatpush3.bf16.msra.mxu1 %v4293_v61 }
 0x58e   : > { %4295 = vmatprep.subr.bf16.mxu1 %v5072_v9 }
 0x591   : > { %4297 = vmatpush3.bf16.msra.mxu1 %v4296_v0 }
 0x592   : > { %4199 = vmatprep.subr.mxu1 %v5074_v12 }
 0x626   : > { %v1665_v25 = vpop.f32.mrb[4].mxu1 }
 0x627   : > { %v4135_v26 = vpop.f32.mrb[5].mxu1 }
 0x62a   : > { %v1832_v27 = vpop.f32.mrb[6].mxu1 }
 0x62b   : > { %2171 = vrot.lane.b32.xlu1 %v1832_v27, %s5086_s24  ;;  %v4145_v28 = vpop.f32.mrb[7].mxu1 }
 0x62c   : > { %v1416_v28 = vld [vmem:[#allocation4] sm:$0xff] }
 0x65b   : > { %v1999_v32 = vpop.f32.mrb[8].mxu1 }
 0x65c   : > { %2175 = vrot.lane.b32.xlu0 %v1999_v32, %s5087_s3  ;;  %v4155_v33 = vpop.f32.mrb[9].mxu1 }
 0x65f   : > { %v2166_v34 = vpop.f32.mrb[10].mxu1 }
 0x660   : > { %2179 = vrot.lane.b32.xlu1 %v2166_v34, %s5088_s28  ;;  %v4165_v35 = vpop.f32.mrb[11].mxu1 }
 0x69d   : > { %v2172_v36 = vpop.permute.xlu1 %2171 }
 0x69e   : > { %v2182_v38 = vsel %vm1505_vm6, %v1665_v25, %v2172_v36 }
 0x6ce   : > { %v2176_v37 = vpop.permute.xlu0 %2175 }
 0x6cf   : > { %v2184_v39 = vsel %vm2183_vm7, %v2182_v38, %v2176_v37 }
 0x6d2   : > { %v2180_v40 = vpop.permute.xlu1 %2179 }
 0x6d3   : > { %v2186_v41 = vsel %vm2185_vm8, %v2184_v39, %v2180_v40 }
 0x6d4   : > { %4175 = vmatmul.mubr.msk.f32.vlgmr.msra.gmra.mrb[6].mxu0 %vm1428_vm5, %v2186_v41 }
 0x6d5   : > { %4196 = vmatprep.mubr.msk.f32.mxu0 %vm5073_vm4, %v5074_v12  ;;  %4300 = vmatpush3.bf16.msra.mxu0 %v4299_v55 }
 0x6d6   : > { %4301 = vmatprep.subr.bf16.mxu0 %v5072_v9 }
 0x7a7   : > { %v2267_v43 = vpop.f32.mrb[6].mxu0 }
 0x7a8   : > { %v2268_v44 = vadd.f32 %v4000_v42, %v2267_v43  ;;  %v4176_v45 = vpop.f32.mrb[7].mxu0 }
 0x7aa   : > { %v2271_v46 = vadd.f32 %v2268_v44, %v5893_v14  ;;  %v2388_v14 = vld [vmem:[%s5784_s23 + $0x10] sm:$0xff] }
 0x7ab   : > { %v4302_v57 = vpack.c.bf16 %v2389_v56, %v2388_v14 }
 0x7ac   : > { %v2274_v47 = vsel %vm1428_vm5, %v2271_v46, 0.0 }
 0x7ad   : > { %2275 = vadd.xlane.f32.xlu0 %v2274_v47  ;;  %4303 = vmatpush3.bf16.msra.mxu0 %v4302_v57 }
 0x7ae   : > { %4209 = vmatprep.subr.mxu0 %v5074_v12 }
 0x7b0   : > { %4197 = vmatmul.mubr.msk.f32.vlgmr.msra.gmra.mrb[8].mxu0 %vm1428_vm5, %v1414_v58 }
 0x7b1   : > { %4211 = vmatprep.mubr.msk.f32.mxu0 %vm5073_vm4, %v5074_v12 }
 0x83a   : > { %v2276_v48 = vpop.xlane.xlu0 %2275 }
 0x83b   : > { %v2278_v49 = vmul.f32 0.03125, %v2276_v48 }
 0x83d   : > { %v2279_v50 = vsub.f32 %v2271_v46, %v2278_v49 }
 0x83f   : > { %v2280_v51 = vmul.f32 %v2279_v50, %v2279_v50 }
 0x841   : > { %v2281_v52 = vsel %vm1428_vm5, %v2280_v51, 0.0 }
 0x842   : > { %2282 = vadd.xlane.f32.xlu1 %v2281_v52 }
 0x883   : > { %v2466_v13 = vpop.f32.mrb[8].mxu0 }
 0x884   : > { %v6028_v15 = vadd.f32 %v4006_v11, %v2466_v13  ;;  %v4198_v16 = vpop.f32.mrb[9].mxu0 }
 0x886   : > { %2637 = vrot.lane.b32.xlu0 %v6028_v15, %s5075_s14 }
 0x88a   : > { %2804 = vrot.lane.b32.xlu0 %v6028_v15, %s5080_s5 }
 0x88e   : > { %2971 = vrot.lane.b32.xlu0 %v6028_v15, %s5081_s22 }
 0x8cf   : > { %v2283_v1 = vpop.xlane.xlu1 %2282 }
 0x8d0   : > { %v2284_v2 = vmul.f32 0.03125, %v2283_v1 }
 0x8d2   : > { %v2285_v3 = vadd.f32 1e-06, %v2284_v2 }
 0x8d4   : > { %4521 = vrsqrt.f32 %v2285_v3 }
 0x8de   : > { %v4522_v4 = vpop.eup %4521 }
 0x8df   : > { %v2287_v6 = vmul.f32 %v4522_v4, %v2279_v50 }
 0x8e1   : > { %v2294_v8 = vmul.f32 %v4002_v5, %v2287_v6 }
 0x8e3   : > { %v6020_v10 = vadd.f32 %v4003_v7, %v2294_v8 }
 0x8e5   : > { %4186 = vmatmul.mubr.msk.f32.vlgmr.msra.gmra.mrb[12].mxu1 %vm1428_vm5, %v6020_v10 }
 0x8e6   : > { %4201 = vmatprep.mubr.msk.f32.mxu1 %vm5073_vm4, %v5074_v12  ;;  %4200 = vmatpush3.xpose.msk.msra.mxu1 %vm1505_vm6, %v6028_v15 }
 0x8e7   : > { %4204 = vmatprep.subr.mxu1 %v5074_v12 }
 0x8f8   : > { %v2638_v17 = vpop.permute.xlu0 %2637 }
 0x8f9   : > { %4210 = vmatpush3.xpose.msk.msra.mxu0 %vm1505_vm6, %v2638_v17 }
 0x8fa   : > { %4219 = vmatprep.subr.mxu0 %v5074_v12 }
 0x8fc   : > { %v2805_v22 = vpop.permute.xlu0 %2804 }
 0x900   : > { %v2972_v25 = vpop.permute.xlu0 %2971 }
 0x9b8   : > { %v2382_v19 = vpop.f32.mrb[12].mxu1 }
 0x9b9   : > { %v2383_v20 = vadd.f32 %v4004_v18, %v2382_v19  ;;  %v4187_v21 = vpop.f32.mrb[13].mxu1 }
 0x9bb   : > { %2635 = vrot.lane.b32.xlu1 %v2383_v20, %s5075_s14  ;;  %4202 = vmatmul.mubr.msk.f32.vlgmr.msra.gmra.mrb[14].mxu1 %vm1505_vm6, %v2383_v20  ;;  %s6441_s14 = scalar_lea.vmem [#allocation23], %s5781_s20 }
 0x9bc   : > { %4206 = vmatprep.mubr.msk.f32.mxu1 %vm5073_vm4, %v5074_v12 }
 0x9bf   : > { %2802 = vrot.lane.b32.xlu1 %v2383_v20, %s5080_s5 }
 0x9c3   : > { %2969 = vrot.lane.b32.xlu1 %v2383_v20, %s5081_s22 }
 0xa2d   : > { %v2636_v23 = vpop.permute.xlu1 %2635 }
 0xa2e   : > { %4212 = vmatmul.mubr.msk.f32.vlgmr.msra.gmra.mrb[10].mxu0 %vm1505_vm6, %v2636_v23 }
 0xa2f   : > { %4220 = vmatpush3.xpose.msk.msra.mxu0 %vm1505_vm6, %v2805_v22  ;;  %4221 = vmatprep.mubr.msk.f32.mxu0 %vm5073_vm4, %v5074_v12 }
 0xa30   : > { %4229 = vmatprep.subr.mxu0 %v5074_v12 }
 0xa31   : > { %v2803_v24 = vpop.permute.xlu1 %2802 }
 0xa32   : > { %4222 = vmatmul.mubr.msk.f32.vlgmr.msra.gmra.mrb[12].mxu0 %vm1505_vm6, %v2803_v24 }
 0xa33   : > { %4230 = vmatpush3.xpose.msk.msra.mxu0 %vm1505_vm6, %v2972_v25  ;;  %4231 = vmatprep.mubr.msk.f32.mxu0 %vm5073_vm4, %v5074_v12  ;;  %v3151_v25 = vld [vmem:[%s5795_s2] sm:$0xff] }
 0xa34   : > { %4304 = vmatprep.subr.bf16.mxu0 %v5072_v9 }
 0xa35   : > { %v2970_v26 = vpop.permute.xlu1 %2969 }
 0xa36   : > { %4232 = vmatmul.mubr.msk.f32.vlgmr.msra.gmra.mrb[14].mxu0 %vm1505_vm6, %v2970_v26  ;;  %v3152_v26 = vld [vmem:[%s5795_s2 + $0x8] sm:$0xff] }
 0xa37   : > { %4247 = vmatprep.mubr.msk.f32.mxu0 %vm5073_vm4, %v5074_v12 }
 0xa8e   : > { %v2542_v27 = vpop.f32.mrb[14].mxu1 }
 0xa8f   : > { %v2546_v29 = vmul.f32 0.35355338, %v2542_v27  ;;  %v4203_v30 = vpop.f32.mrb[15].mxu1  ;;  %v4305_v27 = vpack.c.bf16 %v3152_v26, %v3151_v25 }
 0xa91   : > { %v2547_v31 = vadd.f32 %v2546_v29, %v1416_v28  ;;  %4306 = vmatpush3.bf16.msra.mxu0 %v4305_v27  ;;  %v3154_v29 = vld [vmem:[%s5795_s2 + $0x18] sm:$0xff] }
 0xa92   : > { %4307 = vmatprep.subr.bf16.mxu0 %v5072_v9 }
 0xa93   : > { %v2548_v32 = vsel %vm1505_vm6, %v2547_v31, -inf }
 0xa94   : > { %2549 = vmax.xlane.f32.xlu0 %v2548_v32 }
 0xb01   : > { %v2709_v33 = vpop.f32.mrb[10].mxu0 }
 0xb02   : > { %v2713_v34 = vmul.f32 0.35355338, %v2709_v33  ;;  %v4213_v35 = vpop.f32.mrb[11].mxu0 }
 0xb04   : > { %v2714_v36 = vadd.f32 %v2713_v34, %v1416_v28 }
 0xb05   : > { %v2876_v37 = vpop.f32.mrb[12].mxu0 }
 0xb06   : > { %v2880_v38 = vmul.f32 0.35355338, %v2876_v37  ;;  %v4223_v39 = vpop.f32.mrb[13].mxu0  ;;  %v2715_v40 = vsel %vm1505_vm6, %v2714_v36, -inf }
 0xb07   : > { %2716 = vmax.xlane.f32.xlu1 %v2715_v40 }
 0xb08   : > { %v2881_v41 = vadd.f32 %v2880_v38, %v1416_v28 }
 0xb09   : > { %v3043_v42 = vpop.f32.mrb[14].mxu0 }
 0xb0a   : > { %v3047_v43 = vmul.f32 0.35355338, %v3043_v42  ;;  %v4233_v44 = vpop.f32.mrb[15].mxu0  ;;  %v2882_v45 = vsel %vm1505_vm6, %v2881_v41, -inf }
 0xb0b   : > { %2883 = vmax.xlane.f32.xlu0 %v2882_v45 }
 0xb0c   : > { %v3048_v46 = vadd.f32 %v3047_v43, %v1416_v28  ;;  %v3153_v28 = vld [vmem:[%s5795_s2 + $0x10] sm:$0xff]  ;;  %v4020_v43 = vld [vmem:[%s6438_s4] ss:$0 sm:$0xff]  ;;  %s6439_s2 = scalar_lea.vmem [#allocation19], %s5781_s20 }
 0xb0d   : > { %v4308_v30 = vpack.c.bf16 %v3154_v29, %v3153_v28 }
 0xb0e   : > { %v3049_v47 = vsel %vm1505_vm6, %v3048_v46, -inf }
 0xb0f   : > { %3050 = vmax.xlane.f32.xlu0 %v3049_v47  ;;  %4309 = vmatpush3.bf16.msra.mxu0 %v4308_v30 }
 0xb10   : > { %4316 = vmatprep.subr.bf16.mxu0 %v5072_v9 }
 0xb18   : > { %2559 = vrot.lane.b32.xlu1 %v6028_v15, %s5076_s16 }
 0xb21   : > { %v2550_v48 = vpop.xlane.xlu0 %2549 }
 0xb22   : > { %v2551_v49 = vsub.f32 %v2547_v31, %v2550_v48 }
 0xb24   : > { %v2552_v50 = vmul.f32 1.442695, %v2551_v49 }
 0xb26   : > { %4523 = vpow2.f32 %v2552_v50 }
 0xb30   : > { %v4524_v51 = vpop.eup %4523 }
 0xb31   : > { %v2554_v52 = vsel %vm1505_vm6, %v4524_v51, 0.0 }
 0xb3c   : > { %2555 = vadd.xlane.f32.xlu1 %v2554_v52 }
 0xb94   : > { %v2717_v53 = vpop.xlane.xlu1 %2716 }
 0xb95   : > { %v2718_v54 = vsub.f32 %v2714_v36, %v2717_v53  ;;  %v3265_v53 = vld [vmem:[%s5808_s15] sm:$0xff] }
 0xb97   : > { %v2719_v55 = vmul.f32 1.442695, %v2718_v54  ;;  %v3266_v54 = vld [vmem:[%s5808_s15 + $0x8] sm:$0xff] }
 0xb98   : > { %v2560_v14 = vpop.permute.xlu1 %2559  ;;  %v2884_v56 = vpop.xlane.xlu0 %2883 }
 0xb99   : > { %4525 = vpow2.f32 %v2719_v55  ;;  %v2885_v57 = vsub.f32 %v2881_v41, %v2884_v56  ;;  %4205 = vmatpush3.msra.mxu1 %v2560_v14  ;;  %v4311_v55 = vpack.c.bf16 %v3266_v54, %v3265_v53  ;;  %v3268_v14 = vld [vmem:[%s5808_s15 + $0x18] sm:$0xff] }
 0xb9a   : > { %4214 = vmatprep.subr.mxu1 %v5074_v12 }
 0xb9b   : > { %v2886_v58 = vmul.f32 1.442695, %v2885_v57  ;;  %v3350_v57 = vld [vmem:[%s5860_s17] sm:$0xff] }
 0xb9c   : > { %v3051_v59 = vpop.xlane.xlu0 %3050 }
 0xb9d   : > { %4527 = vpow2.f32 %v2886_v58  ;;  %v3052_v60 = vsub.f32 %v3048_v46, %v3051_v59  ;;  %v3351_v58 = vld [vmem:[%s5860_s17 + $0x8] sm:$0xff]  ;;  %v3352_v59 = vld [vmem:[%s5860_s17 + $0x10] sm:$0xff] }
 0xb9f   : > { %v3053_v61 = vmul.f32 1.442695, %v3052_v60  ;;  %v4317_v60 = vpack.c.bf16 %v3351_v58, %v3350_v57 }
 0xba1   : > { %4529 = vpow2.f32 %v3053_v61  ;;  %v3353_v61 = vld [vmem:[%s5860_s17 + $0x18] sm:$0xff] }
 0xba3   : > { %v4526_v62 = vpop.eup %4525 }
 0xba4   : > { %v2721_v63 = vsel %vm1505_vm6, %v4526_v62, 0.0 }
 0xba5   : > { %2722 = vadd.xlane.f32.xlu0 %v2721_v63  ;;  %v3354_v63 = vld [vmem:[%s5860_s17 + $0x20] sm:$0xff] }
 0xba7   : > { %v4528_v0 = vpop.eup %4527 }
 0xba8   : > { %v2888_v1 = vsel %vm1505_vm6, %v4528_v0, 0.0 }
 0xba9   : > { %2889 = vadd.xlane.f32.xlu1 %v2888_v1 }
 0xbab   : > { %v4530_v2 = vpop.eup %4529 }
 0xbac   : > { %v3055_v3 = vsel %vm1505_vm6, %v4530_v2, 0.0 }
 0xbad   : > { %3056 = vadd.xlane.f32.xlu0 %v3055_v3 }
 0xbba   : > { %2893 = vrot.lane.b32.xlu1 %v6028_v15, %s5077_s18 }
 0xbbe   : > { %3060 = vrot.lane.b32.xlu1 %v6028_v15, %s5079_s26 }
 0xbc3   : > { %2726 = vrot.lane.b32.xlu0 %v6028_v15, %s5078_s19 }
 0xbc9   : > { %v2556_v4 = vpop.xlane.xlu1 %2555 }
 0xbca   : > { %4531 = vrcp.f32 %v2556_v4 }
 0xbd4   : > { %v4532_v5 = vpop.eup %4531 }
 0xbd5   : > { %v2558_v6 = vmul.f32 %v4532_v5, %v4524_v51 }
 0xbd7   : > { %4207 = vmatmul.mubr.msk.f32.vlgmr.msra.gmra.mrb[16].mxu1 %vm1505_vm6, %v2558_v6  ;;  %v4022_v6 = vld [vmem:[%s6439_s2] ss:$0 sm:$0xff] }
 0xbd8   : > { %4216 = vmatprep.mubr.msk.f32.mxu1 %vm5073_vm4, %v5074_v12 }
 0xc32   : > { %v2723_v7 = vpop.xlane.xlu0 %2722 }
 0xc33   : > { %4533 = vrcp.f32 %v2723_v7 }
 0xc36   : > { %v2890_v8 = vpop.xlane.xlu1 %2889 }
 0xc37   : > { %4535 = vrcp.f32 %v2890_v8 }
 0xc3a   : > { %v3057_v11 = vpop.xlane.xlu0 %3056  ;;  %v2894_v17 = vpop.permute.xlu1 %2893 }
 0xc3b   : > { %4537 = vrcp.f32 %v3057_v11 }
 0xc3d   : > { %v4534_v13 = vpop.eup %4533 }
 0xc3e   : > { %v2725_v16 = vmul.f32 %v4534_v13, %v4526_v62  ;;  %v2727_v18 = vpop.permute.xlu0 %2726  ;;  %v3061_v20 = vpop.permute.xlu1 %3060  ;;  %v4320_v62 = vpack.c.bf16 %v3353_v61, %v3352_v59 }
 0xc3f   : > { %4215 = vmatpush3.msra.mxu1 %v2727_v18 }
 0xc40   : > { %4217 = vmatmul.mubr.msk.f32.vlgmr.msra.gmra.mrb[18].mxu1 %vm1505_vm6, %v2725_v16  ;;  %4224 = vmatprep.subr.mxu1 %v5074_v12  ;;  %v3356_v16 = vld [vmem:[%s5860_s17 + $0x30] sm:$0xff] }
 0xc41   : > { %v4536_v15 = vpop.eup %4535  ;;  %4225 = vmatpush3.msra.mxu1 %v2894_v17  ;;  %4226 = vmatprep.mubr.msk.f32.mxu1 %vm5073_vm4, %v5074_v12  ;;  %v3357_v17 = vld [vmem:[%s5860_s17 + $0x38] sm:$0xff] }
 0xc42   : > { %v2892_v19 = vmul.f32 %v4536_v15, %v4528_v0  ;;  %4234 = vmatprep.subr.mxu1 %v5074_v12  ;;  %v3355_v0 = vld [vmem:[%s5860_s17 + $0x28] sm:$0xff]  ;;  %v4326_v18 = vpack.c.bf16 %v3357_v17, %v3356_v16 }
 0xc43   : > { %v4323_v1 = vpack.c.bf16 %v3355_v0, %v3354_v63 }
 0xc44   : > { %4227 = vmatmul.mubr.msk.f32.vlgmr.msra.gmra.mrb[20].mxu1 %vm1505_vm6, %v2892_v19 }
 0xc45   : > { %v4538_v21 = vpop.eup %4537  ;;  %4235 = vmatpush3.msra.mxu1 %v3061_v20  ;;  %4236 = vmatprep.mubr.msk.f32.mxu1 %vm5073_vm4, %v5074_v12 }
 0xc46   : > { %v3059_v22 = vmul.f32 %v4538_v21, %v4530_v2  ;;  %4310 = vmatprep.subr.bf16.mxu1 %v5072_v9 }
 0xc48   : > { %4237 = vmatmul.mubr.msk.f32.vlgmr.msra.gmra.mrb[22].mxu1 %vm1505_vm6, %v3059_v22  ;;  %v4026_v22 = vld [vmem:[%s1390_s30] ss:$0 sm:$0xff] }
 0xc49   : > { %4258 = vmatprep.mubr.msk.f32.mxu1 %vm5073_vm4, %v5074_v12  ;;  %4312 = vmatpush3.bf16.msra.mxu1 %v4311_v55 }
 0xc4a   : > { %4313 = vmatprep.subr.bf16.mxu1 %v5072_v9 }
 0xcaa   : > { %v2631_v23 = vpop.f32.mrb[16].mxu1 }
 0xcab   : > { %v4208_v24 = vpop.f32.mrb[17].mxu1 }
 0xd13   : > { %v2798_v31 = vpop.f32.mrb[18].mxu1 }
 0xd14   : > { %3137 = vrot.lane.b32.xlu0 %v2798_v31, %s5086_s24  ;;  %v4218_v32 = vpop.f32.mrb[19].mxu1  ;;  %s6445_s24 = sld [smem:[#allocation40_spill]] }
 0xd17   : > { %v2965_v33 = vpop.f32.mrb[20].mxu1 }
 0xd18   : > { %3141 = vrot.lane.b32.xlu1 %v2965_v33, %s5087_s3  ;;  %v4228_v34 = vpop.f32.mrb[21].mxu1 }
 0xd1a   : > { %p4030_p3 = scmp.ne.s32.totalorder %s6445_s24, 1 }
 0xd1b   : > { %v3132_v35 = vpop.f32.mrb[22].mxu1  ;;  %s6447_s10 = sld [smem:[#allocation81_spill]] (!%p4030_p3) }
 0xd1c   : > { %3145 = vrot.lane.b32.xlu0 %v3132_v35, %s5088_s28  ;;  %v4238_v36 = vpop.f32.mrb[23].mxu1 }
 0xd21   : > { %v4032_v53 = vld [vmem:[%s6447_s10] ss:$0 sm:$0xff] (!%p4030_p3) }
 0xd86   : > { %v3138_v37 = vpop.permute.xlu0 %3137 }
 0xd87   : > { %v3148_v39 = vsel %vm1505_vm6, %v2631_v23, %v3138_v37  ;;  %v4028_v37 = vld [vmem:[%s1393_s11] ss:$0 sm:$0xff]  ;;  %s6446_s11 = sld [smem:[#allocation80_spill]] (!%p4030_p3) }
 0xd8a   : > { %v3142_v38 = vpop.permute.xlu1 %3141 }
 0xd8b   : > { %v3149_v40 = vsel %vm2183_vm7, %v3148_v39, %v3142_v38  ;;  %v4029_v39 = vld [vmem:[%s1396_s9] ss:$0 sm:$0xff] }
 0xd8e   : > { %v3146_v41 = vpop.permute.xlu0 %3145 }
 0xd8f   : > { %v3150_v42 = vsel %vm2185_vm8, %v3149_v40, %v3146_v41 }
 0xd90   : > { %4248 = vmatmul.mubr.msk.f32.vlgmr.msra.gmra.mrb[16].mxu0 %vm1428_vm5, %v3150_v42 }
 0xd91   : > { %4277 = vmatprep.mubr.msk.f32.mxu0 %vm5073_vm4, %v5074_v12  ;;  %4318 = vmatpush3.bf16.msra.mxu0 %v4317_v60 }
 0xd92   : > { %4319 = vmatprep.subr.bf16.mxu0 %v5072_v9 }
 0xd95   : > { %4321 = vmatpush3.bf16.msra.mxu0 %v4320_v62 }
 0xd96   : > { %4322 = vmatprep.subr.bf16.mxu0 %v5072_v9 }
 0xd99   : > { %4324 = vmatpush3.bf16.msra.mxu0 %v4323_v1 }
 0xd9a   : > { %4325 = vmatprep.subr.bf16.mxu0 %v5072_v9  ;;  %v4024_v9 = vld [vmem:[%s6441_s14] ss:$0 sm:$0xff] }
 0xd9d   : > { %4327 = vmatpush3.bf16.msra.mxu0 %v4326_v18 }
 0xe63   : > { %v3231_v44 = vpop.f32.mrb[16].mxu0 }
 0xe64   : > { %v3232_v45 = vadd.f32 %v4020_v43, %v3231_v44  ;;  %v4249_v46 = vpop.f32.mrb[17].mxu0 }
 0xe66   : > { %v3235_v47 = vadd.f32 %v3232_v45, %v6020_v10  ;;  %v3267_v10 = vld [vmem:[%s5808_s15 + $0x10] sm:$0xff]  ;;  %s6440_s15 = scalar_lea.vmem [#allocation20], %s5781_s20 }
 0xe67   : > { %v4314_v56 = vpack.c.bf16 %v3268_v14, %v3267_v10  ;;  %v4023_v8 = vld [vmem:[%s6440_s15] ss:$0 sm:$0xff] }
 0xe68   : > { %v3238_v48 = vsel %vm1428_vm5, %v3235_v47, 0.0 }
 0xe69   : > { %3239 = vadd.xlane.f32.xlu1 %v3238_v48  ;;  %4315 = vmatpush3.bf16.msra.mxu1 %v4314_v56 }
 0xef6   : > { %v3240_v49 = vpop.xlane.xlu1 %3239 }
 0xef7   : > { %v3241_v50 = vmul.f32 0.03125, %v3240_v49 }
 0xef9   : > { %v3242_v51 = vsub.f32 %v3235_v47, %v3241_v50 }
 0xefb   : > { %v3243_v52 = vmul.f32 %v3242_v51, %v3242_v51 }
 0xefd   : > { %v3244_v12 = vsel %vm1428_vm5, %v3243_v52, 0.0  ;;  %v4031_v52 = vld [vmem:[%s6446_s11] ss:$0 sm:$0xff] (!%p4030_p3) }
 0xefe   : > { %3245 = vadd.xlane.f32.xlu0 %v3244_v12 }
 0xf8b   : > { %v3246_v2 = vpop.xlane.xlu0 %3245 }
 0xf8c   : > { %v3247_v3 = vmul.f32 0.03125, %v3246_v2 }
 0xf8e   : > { %v3248_v4 = vadd.f32 1e-06, %v3247_v3 }
 0xf90   : > { %4539 = vrsqrt.f32 %v3248_v4 }
 0xf9a   : > { %v4540_v5 = vpop.eup %4539 }
 0xf9b   : > { %v3250_v7 = vmul.f32 %v4540_v5, %v3242_v51 }
 0xf9d   : > { %v3257_v11 = vmul.f32 %v4022_v6, %v3250_v7 }
 0xf9f   : > { %v3264_v13 = vadd.f32 %v4023_v8, %v3257_v11 }
 0xfa1   : > { %4259 = vmatmul.mubr.msk.f32.vlgmr.msra.gmra.mrb[24].mxu1 %vm1428_vm5, %v3264_v13 }
0x1074   : > { %v3345_v15 = vpop.f32.mrb[24].mxu1 }
0x1075   : > { %v3346_v19 = vadd.f32 %v4024_v9, %v3345_v15  ;;  %v4260_v20 = vpop.f32.mrb[25].mxu1 }
0x1077   : > { %v3349_v21 = vmax.f32 %v3346_v19, 0.0 }
0x1079   : > { %4278 = vmatmul.mubr.msk.f32.vlgmr.msra.gmra.mrb[18].mxu0 %vm3365_vm9, %v3349_v21 }
0x114c   : > { %v3435_v23 = vpop.f32.mrb[18].mxu0 }
0x114d   : > { %v3436_v24 = vadd.f32 %v4026_v22, %v3435_v23  ;;  %v4279_v25 = vpop.f32.mrb[19].mxu0 }
0x114f   : > { %v3439_v26 = vadd.f32 %v3436_v24, %v3264_v13 }
0x1151   : > { %v3442_v27 = vsel %vm1428_vm5, %v3439_v26, 0.0 }
0x1152   : > { %3443 = vadd.xlane.f32.xlu0 %v3442_v27 }
0x11df   : > { %v3444_v28 = vpop.xlane.xlu0 %3443 }
0x11e0   : > { %v3445_v29 = vmul.f32 0.03125, %v3444_v28 }
0x11e2   : > { %v3446_v30 = vsub.f32 %v3439_v26, %v3445_v29 }
0x11e4   : > { %v3447_v31 = vmul.f32 %v3446_v30, %v3446_v30 }
0x11e6   : > { %v3448_v32 = vsel %vm1428_vm5, %v3447_v31, 0.0 }
0x11e7   : > { %3449 = vadd.xlane.f32.xlu1 %v3448_v32 }
0x1274   : > { %v3450_v33 = vpop.xlane.xlu1 %3449 }
0x1275   : > { %v3451_v34 = vmul.f32 0.03125, %v3450_v33 }
0x1277   : > { %v3452_v35 = vadd.f32 1e-06, %v3451_v34 }
0x1279   : > { %4541 = vrsqrt.f32 %v3452_v35 }
0x1283   : > { %v4542_v36 = vpop.eup %4541 }
0x1284   : > { %v3454_v38 = vmul.f32 %v4542_v36, %v3446_v30  ;;  %3473 = sbr.rel (%p4030_p3) target bundleno = 5060 (0x13c4), region = 180 }
0x1286   : > { %v3461_v40 = vmul.f32 %v4028_v37, %v3454_v38 }
0x1288   : > { %v3468_v41 = vadd.f32 %v4029_v39, %v3461_v40 }
0x128a   : > { %3469 = vst.msk [vmem:[#allocation2] sm:$0xff] %vm1428_vm5, %v3468_v41  ;;  %v3476_v42 = vsel (!%p4030_p3), %vm1428_vm5, %v3468_v41, 0.0 }
0x128b   : > { %3477 = vadd.xlane.f32.xlu0 %v3476_v42 }
0x1318   : > { %v3478_v43 = vpop.xlane.xlu0 %3477 }
0x1319   : > { %v3479_v44 = vmul.f32 0.03125, %v3478_v43 }
0x131b   : > { %v3480_v45 = vsub.f32 %v3468_v41, %v3479_v44 }
0x131d   : > { %v3481_v46 = vmul.f32 %v3480_v45, %v3480_v45 }
0x131f   : > { %v3482_v47 = vsel %vm1428_vm5, %v3481_v46, 0.0 }
0x1320   : > { %3483 = vadd.xlane.f32.xlu0 %v3482_v47 }
0x13ad   : > { %v3484_v48 = vpop.xlane.xlu0 %3483 }
0x13ae   : > { %v3485_v49 = vmul.f32 0.03125, %v3484_v48 }
0x13b0   : > { %v3486_v50 = vadd.f32 1e-06, %v3485_v49 }
0x13b2   : > { %4543 = vrsqrt.f32 %v3486_v50 }
0x13bc   : > { %v4544_v51 = vpop.eup %4543 }
0x13bd   : > { %v3488_v12 = vmul.f32 %v4544_v51, %v3480_v45 }
0x13bf   : > { %v3495_v54 = vmul.f32 %v4031_v52, %v3488_v12 }
0x13c1   : > { %v3502_v55 = vadd.f32 %v4032_v53, %v3495_v54 }
0x13c3   : > { %3503 = vst.msk [vmem:[%s1352_s1] sm:$0xff] %vm1428_vm5, %v3502_v55 }
0x13c4 PF: > { %s6448_s21 = sld [smem:[#allocation41_spill]]  ;;  %s6450_s25 = sld [smem:[#allocation48_spill]] }
0x13c5   : > { %s6449_s6 = sld [smem:[#allocation55_spill]]  ;;  %s6451_s0 = sld [smem:[#allocation82_spill]] }
0x13c6   : > { %s3518_s4 = sshll.u32 %s1352_s1, 4  ;;  %s5089_s14 = smov [#allocation25]   ;;  %s3519_s4 = int_to_ptr.vmem [resolvable:$true] %s3518_s4 }
0x13c7   : > { %s4905_s15 = scalar_lea.vmem %s3519_s4, 128  ;;  %s4909_s16 = sshll.u32 %s5089_s14, 4  ;;  %s4910_s16 = int_to_ptr.vmem [resolvable:$false] %s4909_s16 }
0x13c8   : > { %p4906_p1 = scmp.ne.s32.totalorder %s3519_s4, %s4905_s15  ;;  %s4911_s18 = scalar_lea.vmem %s4910_s16, 256 }
0x13c9   : > { %p4912_p10 = scmp.lt.s32.totalorder %s3519_s4, %s4910_s16  ;;  %p4913_p2 = scmp.lt.s32.totalorder %s4911_s18, %s4905_s15 }
0x13ca   : > { %s4034_s13 = sshll.u32 %s6448_s21, 7  ;;  %p6453_p8 = scmp.ne.s32.totalorder %s6450_s25, 0 }
0x13cb   : > { %s6452_s23 = smov %s6451_s0  ;;  %s6174_s27 = scalar_lea.hbm %s6451_s0, %s4034_s13 }
0x13cc   : > { %s3505_s2 = scalar_lea.sflag [#allocation7], %s6449_s6  ;;  %p4907_p12 = pnand %p4906_p1, %p6453_p8 }
0x13cd   : > { %p4914_p0 = por %p4913_p2, %p4912_p10 }
0x13ce   : > { %p4908_p6 = pneg %p4907_p12 }
0x13d0   : > { %p4915_p13 = pnand %p4914_p0, %p4908_p6 }
0x13d2   : > { %4918 = shalt.err (!%p4915_p13)
}
0x13d3   : > { %s4919_s8 = scalar_lea.hbm %s6174_s27, 128  ;;  %s4923_s17 = scalar_lea.hbm %s6452_s23, 256 }
0x13d4   : > { %p4920_p4 = scmp.ne.s32.totalorder %s6174_s27, %s4919_s8  ;;  %p4924_p9 = scmp.lt.u32.totalorder %s6174_s27, %s6452_s23 }
0x13d5   : > { %p4925_p7 = scmp.lt.u32.totalorder %s4923_s17, %s4919_s8  ;;  %p4927_p1 = scmp.lt.u32.totalorder %s4919_s8, %s6174_s27 }
0x13d6   : > { %p4921_p5 = pnand %p4920_p4, %p6453_p8 }
0x13d7   : > { %p4926_p3 = por %p4925_p7, %p4924_p9 }
0x13d8   : > { %p4922_p11 = pneg %p4921_p5 }
0x13d9   : > { %p4928_p12 = por %p4927_p1, %p4926_p3 }
0x13db   : > { %p4929_p6 = pnand %p4928_p12, %p4922_p11 }
0x13dd   : > { %4932 = shalt.err (!%p4929_p6)
}
0x13de   : > { %4352 = dma.vmem_to_hbm [thread:$0]  (%p6453_p8), %s3519_s4, 128, %s6174_s27, %s3505_s2  }
0x13df PF: > { %s6454_s26 = sld [smem:[#allocation44_spill]]  ;;  %s6455_s5 = sld [smem:[#allocation37_spill]] }
0x13e0   : > { %s6456_s22 = sld [smem:[#allocation49_spill]] }
0x13e5   : > { %p4396_p10 = scmp.ge.s32.totalorder %s6454_s26, 2  ;;  %s3530_s24 = sand.u32 1, %s6455_s5  }
0x13e6   : > { %p6457_p2 = scmp.ne.s32.totalorder %s6456_s22, 0  ;;  %s3531_s9 = scalar_lea.sflag [#allocation7], %s3530_s24 }
0x13e8   : > { %p4392_p0 = pnand %p4396_p10, %p6457_p2 }
0x13ea   : > { %5010 = dma.done.wait (!%p4392_p0), %s3531_s9, 128  }
0x13eb   : > { %5012 = vsyncadd (!%p4392_p0), %s3531_s9, 4294967168  ;;  %s60_s2 = sadd.s32 1, %s6454_s26   ;;  %s6458_s27 = sld [smem:[#allocation35_spill]] }
0x13ec   : > { %p57_p13 = scmp.ge.s32.totalorder %s60_s2, 6   ;;  %s6459_s3 = sld [smem:[#allocation36_spill]] }
0x13ed   : > { %s6460_s7 = sld [smem:[#allocation53_spill]]  ;;  %s6461_s28 = sld [smem:[#allocation38_spill]] }
0x13ee   : > { %s6462_s8 = sld [smem:[#allocation39_spill]]  ;;  %s6463_s4 = sld [smem:[#allocation54_spill]] }
0x13ef   : > { %s6464_s29 = sld [smem:[#allocation42_spill]]  ;;  %s6465_s0 = sld [smem:[#allocation43_spill]] }
0x13f0   : > { %s6466_s9 = sld [smem:[#allocation51_spill]]  ;;  %s6467_s30 = sld [smem:[#allocation52_spill]] }
0x13f1   :  { %59 = sbr.rel (!%p57_p13) target bundleno = 49 (0x31), region = 346 }
0x13f8   :  { %3536 = vsyncpa [#allocation6], 1 }
0x13f9   :  { %3538 = vsyncpa [#allocation6 + $0x1], 1 }
0x13fa   :  { %3539 = vsyncpa [#allocation9], 1 }
0x13fb   :  { %3541 = vsyncpa [#allocation9 + $0x1], 1 }
0x13fc   :  { %3542 = vsyncpa [#allocation12], 1 }
0x13fd   :  { %3544 = vsyncpa [#allocation12 + $0x1], 1 }
0x13fe   :  { %3545 = vsyncpa [#allocation15], 1 }
0x13ff   :  { %3547 = vsyncpa [#allocation15 + $0x1], 1 }
0x1400   :  { %3548 = vsyncpa [#allocation18], 1 }
0x1401   :  { %3550 = vsyncpa [#allocation18 + $0x1], 1 }
0x1402   :  { %3551 = vsyncpa [#allocation21], 1 }
0x1403   :  { %3553 = vsyncpa [#allocation21 + $0x1], 1 }
0x1404   :  { %3554 = vsyncpa [#allocation24], 1 }
0x1405   :  { %3556 = vsyncpa [#allocation24 + $0x1], 1 }
0x1406   :  { %3557 = vsyncpa [#allocation7], 1 }
0x1407   :  { %3559 = vsyncpa [#allocation7 + $0x1], 1 }

</bundles_post_ra>
